<compile_context>
chip_gen: v7x
topology: tpu7x:2x2x1
jax: 0.10.0
libtpu: 0.0.40
codegen_flags: <defaults>
</compile_context>

<pallas_src>
import jax
import jax.numpy as jnp
from jax.experimental import pallas as pl
from jax.experimental.pallas import tpu as pltpu

N_NEURONS = 64
PE = 5                                   # POSITIONAL_ENCODING_BASIS_NUM
D_X, D_A, D_CO = 2, 1, 3
N_FEAT = D_X + D_CO + D_A                # 6 raw features (x, x_co, alpha)
D_RAW8 = 8                               # raw features padded to a full sublane group
L1_K = D_RAW8 * (1 + 2 * PE)             # 88 = raw block + 5 sin groups + 5 cos groups
IN_DIM = D_X * (1 + 2 * PE) + D_A + D_CO * (1 + 2 * PE)   # 56 (what forward builds)
OUT_DIM = 1
MAX_TB = 1024                            # max batch tile (lane axis), multiple of 128


def _silu(v):
    # SiLU(v) = v * sigmoid(v); sigmoid in tanh form => one EUP push / element.
    return 0.5 * v * (1.0 + jnp.tanh(0.5 * v))


def mlp_kernel(raw_ref,
               w1_ref, b1_ref, w2_ref, b2_ref, w3_ref, b3_ref,
               w4_ref, b4_ref, wo_ref, bo_ref, o_ref):
    raw = raw_ref[...]                                           # [8,  TB]

    # In-kernel positional encoding: 5 frequency-scaled copies of the 8-row
    # raw block, sin/cos on each; all blocks are 8-row (sublane) aligned.
    scaled = [raw * jnp.float32(2.0 ** k) for k in range(PE)]    # 5 x [8, TB]
    feat = jnp.concatenate(
        [raw] + [jnp.sin(s) for s in scaled] + [jnp.cos(s) for s in scaled],
        axis=0)                                                  # [88, TB]

    # Layer 1: single MXU push (zero weight columns cover the padding rows).
    h = _silu(jnp.dot(w1_ref[...], feat, preferred_element_type=jnp.float32)
              + b1_ref[...])                                     # [64, TB]
    h = _silu(jnp.dot(w2_ref[...], h, preferred_element_type=jnp.float32) + b2_ref[...])
    h = _silu(jnp.dot(w3_ref[...], h, preferred_element_type=jnp.float32) + b3_ref[...])
    h = _silu(jnp.dot(w4_ref[...], h, preferred_element_type=jnp.float32) + b4_ref[...])

    # Output layer (N=1): broadcast-multiply + sublane (XLU) reduce -> lane-dense [1, TB].
    out = jnp.sum(h * wo_ref[...], axis=0, keepdims=True) + bo_ref[...]
    o_ref[...] = out.astype(o_ref.dtype)


def _tiling(batch):
    """Pick (batch_tile, padded_batch): tile <= MAX_TB, multiple of 128, and an
    even grid length whenever batch > 128 so v7x can shard both TensorCores."""
    bp128 = 128 * ((batch + 127) // 128)
    if bp128 <= 128:
        return 128, 128
    steps = max(2, 2 * ((bp128 + 2 * MAX_TB - 1) // (2 * MAX_TB)))  # even
    tb = 128 * ((bp128 + steps * 128 - 1) // (steps * 128))
    return tb, tb * steps


def _build_l1_weight(w1):
    """Regroup the canonical [56, 64] layer-1 weight into a single [64, 88]
    matrix matching the kernel's (raw8 | sin groups | cos groups) operand,
    with zero columns for the padding rows."""
    w1 = jnp.asarray(w1, jnp.float32)
    z2 = jnp.zeros((2, N_NEURONS), jnp.float32)
    z3 = jnp.zeros((3, N_NEURONS), jnp.float32)
    # raw8 rows: x0, x1, co0, co1, co2, alpha, 0, 0
    rows = [w1[0:2], w1[23:26], w1[22:23], z2]
    for k in range(PE):       # sin(x*2^k) [2 rows], sin(co*2^k) [3 rows], pad
        rows += [w1[2 + 4 * k:4 + 4 * k], w1[26 + 6 * k:29 + 6 * k], z3]
    for k in range(PE):       # cos(x*2^k), cos(co*2^k), pad
        rows += [w1[4 + 4 * k:6 + 4 * k], w1[29 + 6 * k:32 + 6 * k], z3]
    return jnp.concatenate(rows, axis=0).T            # [64, 88]


@jax.jit
def nn_forward(x, alpha, x_co, params):
    """x:[B,2], alpha:[B,1], x_co:[B,3]  ->  [B,1]."""
    w1, b1, w2, b2, w3, b3, w4, b4, wo, bo = params
    B = x.shape[0]
    TB, Bp = _tiling(B)
    pad = Bp - B

    # Minimal layout prep: one feature-major [8, Bp] slab (no PE expansion here).
    raw = jnp.concatenate([x, x_co, alpha], axis=1).astype(jnp.float32)   # [B, 6]
    raw8 = jnp.pad(raw.T, ((0, D_RAW8 - N_FEAT), (0, pad)))               # [8, Bp]

    w1m = _build_l1_weight(w1)                                            # [64, 88]

    def batch_spec(rows):
        return pl.BlockSpec((rows, TB), lambda i: (0, i))

    def const_spec(shape):
        return pl.BlockSpec(shape, lambda i: (0, 0))

    n_params = (L1_K * N_NEURONS + N_NEURONS
                + 3 * (N_NEURONS * N_NEURONS + N_NEURONS)
                + N_NEURONS + 1)
    cost = pl.CostEstimate(
        flops=2 * Bp * (L1_K * N_NEURONS + 3 * N_NEURONS * N_NEURONS + N_NEURONS),
        transcendentals=Bp * (2 * PE * D_RAW8 + 4 * N_NEURONS),
        bytes_accessed=4 * (Bp * (D_RAW8 + OUT_DIM) + n_params),
    )

    out_t = pl.pallas_call(
        mlp_kernel,
        out_shape=jax.ShapeDtypeStruct((OUT_DIM, Bp), jnp.float32),
        grid=(Bp // TB,),
        in_specs=[
            batch_spec(D_RAW8),                      # raw features   [8, TB]
            const_spec((N_NEURONS, L1_K)),           # W1 merged      [64, 88]
            const_spec((N_NEURONS, 1)),              # b1
            const_spec((N_NEURONS, N_NEURONS)),      # W2
            const_spec((N_NEURONS, 1)),              # b2
            const_spec((N_NEURONS, N_NEURONS)),      # W3
            const_spec((N_NEURONS, 1)),              # b3
            const_spec((N_NEURONS, N_NEURONS)),      # W4
            const_spec((N_NEURONS, 1)),              # b4
            const_spec((N_NEURONS, 1)),              # Wo (column)
            const_spec((1, 1)),                      # bo
        ],
        out_specs=batch_spec(OUT_DIM),
        compiler_params=pltpu.CompilerParams(
            dimension_semantics=("parallel",),
            vmem_limit_bytes=32 * 1024 * 1024,
        ),
        cost_estimate=cost,
    )(raw8, w1m, b1.reshape(N_NEURONS, 1),
      w2.T, b2.reshape(N_NEURONS, 1),
      w3.T, b3.reshape(N_NEURONS, 1),
      w4.T, b4.reshape(N_NEURONS, 1),
      wo.reshape(N_NEURONS, 1), bo.reshape(1, 1))

    return out_t[:, :B].T                                                  # [B, 1]


# ---------------- reference path (plain JAX) + params ----------------

def positional_encoding(v, num_encoding_functions=PE):
    """JAX equivalent of positional_encoding_1 (include_input=True, log_sampling)."""
    parts = [v]
    for k in range(num_encoding_functions):
        f = jnp.float32(2.0 ** k)
        parts.append(jnp.sin(v * f))
        parts.append(jnp.cos(v * f))
    return jnp.concatenate(parts, axis=-1)


def nn_forward_ref(x, alpha, x_co, params):
    w1, b1, w2, b2, w3, b3, w4, b4, wo, bo = params
    feat = jnp.concatenate(
        [positional_encoding(x), alpha, positional_encoding(x_co)], axis=1)
    h = jax.nn.silu(feat @ w1 + b1)
    h = jax.nn.silu(h @ w2 + b2)
    h = jax.nn.silu(h @ w3 + b3)
    h = jax.nn.silu(h @ w4 + b4)
    return h @ wo + bo


def init_params(key):
    """torch.nn.Linear-like uniform init; weights stored [in_features, out_features]."""
    def linear(k, fan_in, fan_out):
        kw, kb = jax.random.split(k)
        bound = fan_in ** -0.5
        w = jax.random.uniform(kw, (fan_in, fan_out), jnp.float32, -bound, bound)
        b = jax.random.uniform(kb, (fan_out,), jnp.float32, -bound, bound)
        return w, b

    k1, k2, k3, k4, k5 = jax.random.split(key, 5)
    w1, b1 = linear(k1, IN_DIM, N_NEURONS)
    w2, b2 = linear(k2, N_NEURONS, N_NEURONS)
    w3, b3 = linear(k3, N_NEURONS, N_NEURONS)
    w4, b4 = linear(k4, N_NEURONS, N_NEURONS)
    wo, bo = linear(k5, N_NEURONS, OUT_DIM)
    return (w1, b1, w2, b2, w3, b3, w4, b4, wo, bo)


if __name__ == "__main__":
    key = jax.random.PRNGKey(0)
    kx, ka, kc, kp = jax.random.split(key, 4)

    B = 200                      # deliberately not a multiple of 128 (pad + 2-step grid)
    x = jax.random.normal(kx, (B, D_X), jnp.float32)
    alpha = jax.random.normal(ka, (B, D_A), jnp.float32)
    x_co = jax.random.normal(kc, (B, D_CO), jnp.float32)
    params = init_params(kp)

    out = nn_forward(x, alpha, x_co, params)
    jax.block_until_ready(out)

    ref = nn_forward_ref(x, alpha, x_co, params)
    assert out.shape == (B, OUT_DIM)
    err = float(jnp.max(jnp.abs(out - ref)))
    assert jnp.allclose(out, ref, atol=1e-4, rtol=1e-4), f"max abs err = {err}"

    print("KERNEL_OK")
</pallas_src>

<mosaic_0001>
module attributes {stable_mosaic.version = 11 : i64} {
  func.func @mlp_kernel(%arg0: i32, %arg1: memref<8x128xf32, #tpu.memory_space<vmem>>, %arg2: memref<64x88xf32, #tpu.memory_space<vmem>>, %arg3: memref<64x1xf32, #tpu.memory_space<vmem>>, %arg4: memref<64x64xf32, #tpu.memory_space<vmem>>, %arg5: memref<64x1xf32, #tpu.memory_space<vmem>>, %arg6: memref<64x64xf32, #tpu.memory_space<vmem>>, %arg7: memref<64x1xf32, #tpu.memory_space<vmem>>, %arg8: memref<64x64xf32, #tpu.memory_space<vmem>>, %arg9: memref<64x1xf32, #tpu.memory_space<vmem>>, %arg10: memref<64x1xf32, #tpu.memory_space<vmem>>, %arg11: memref<1x1xf32, #tpu.memory_space<vmem>>, %arg12: memref<1x128xf32, #tpu.memory_space<vmem>>) attributes {dimension_semantics = [#tpu.dimension_semantics<parallel>], iteration_bounds = array<i64: 2>, scalar_prefetch = 0 : i64, scratch_operands = 0 : i64, tpu.core_type = #tpu.core_type<tc>, window_params = [{transform_indices = @transform_0, window_bounds = array<i64: 8, 128>}, {pipeline_mode = #tpu.pipeline_mode<synchronous>, transform_indices = @transform_1, window_bounds = array<i64: 64, 88>}, {pipeline_mode = #tpu.pipeline_mode<synchronous>, transform_indices = @transform_2, window_bounds = array<i64: 64, 1>}, {pipeline_mode = #tpu.pipeline_mode<synchronous>, transform_indices = @transform_3, window_bounds = array<i64: 64, 64>}, {pipeline_mode = #tpu.pipeline_mode<synchronous>, transform_indices = @transform_4, window_bounds = array<i64: 64, 1>}, {pipeline_mode = #tpu.pipeline_mode<synchronous>, transform_indices = @transform_5, window_bounds = array<i64: 64, 64>}, {pipeline_mode = #tpu.pipeline_mode<synchronous>, transform_indices = @transform_6, window_bounds = array<i64: 64, 1>}, {pipeline_mode = #tpu.pipeline_mode<synchronous>, transform_indices = @transform_7, window_bounds = array<i64: 64, 64>}, {pipeline_mode = #tpu.pipeline_mode<synchronous>, transform_indices = @transform_8, window_bounds = array<i64: 64, 1>}, {pipeline_mode = #tpu.pipeline_mode<synchronous>, transform_indices = @transform_9, window_bounds = array<i64: 64, 1>}, {pipeline_mode = #tpu.pipeline_mode<synchronous>, transform_indices = @transform_10, window_bounds = array<i64: 1, 1>}, {transform_indices = @transform_11, window_bounds = array<i64: 1, 128>}]} {
    %c0 = arith.constant 0 : index
    %c0_0 = arith.constant 0 : index
    %0 = vector.load %arg1[%c0, %c0_0] : memref<8x128xf32, #tpu.memory_space<vmem>>, vector<8x128xf32>
    %cst = arith.constant 1.000000e+00 : f32
    %1 = vector.broadcast %cst : f32 to vector<8x128xf32>
    %2 = arith.mulf %0, %1 : vector<8x128xf32>
    %cst_1 = arith.constant 2.000000e+00 : f32
    %3 = vector.broadcast %cst_1 : f32 to vector<8x128xf32>
    %4 = arith.mulf %0, %3 : vector<8x128xf32>
    %cst_2 = arith.constant 4.000000e+00 : f32
    %5 = vector.broadcast %cst_2 : f32 to vector<8x128xf32>
    %6 = arith.mulf %0, %5 : vector<8x128xf32>
    %cst_3 = arith.constant 8.000000e+00 : f32
    %7 = vector.broadcast %cst_3 : f32 to vector<8x128xf32>
    %8 = arith.mulf %0, %7 : vector<8x128xf32>
    %cst_4 = arith.constant 1.600000e+01 : f32
    %9 = vector.broadcast %cst_4 : f32 to vector<8x128xf32>
    %10 = arith.mulf %0, %9 : vector<8x128xf32>
    %11 = math.sin %2 : vector<8x128xf32>
    %12 = math.sin %4 : vector<8x128xf32>
    %13 = math.sin %6 : vector<8x128xf32>
    %14 = math.sin %8 : vector<8x128xf32>
    %15 = math.sin %10 : vector<8x128xf32>
    %16 = math.cos %2 : vector<8x128xf32>
    %17 = math.cos %4 : vector<8x128xf32>
    %18 = math.cos %6 : vector<8x128xf32>
    %19 = math.cos %8 : vector<8x128xf32>
    %20 = math.cos %10 : vector<8x128xf32>
    %21 = tpu.concatenate %0, %11, %12, %13, %14, %15, %16, %17, %18, %19, %20 in 0 : vector<8x128xf32>, vector<8x128xf32>, vector<8x128xf32>, vector<8x128xf32>, vector<8x128xf32>, vector<8x128xf32>, vector<8x128xf32>, vector<8x128xf32>, vector<8x128xf32>, vector<8x128xf32>, vector<8x128xf32> -> vector<88x128xf32>
    %c0_5 = arith.constant 0 : index
    %c0_6 = arith.constant 0 : index
    %22 = vector.load %arg2[%c0_5, %c0_6] : memref<64x88xf32, #tpu.memory_space<vmem>>, vector<64x88xf32>
    %cst_7 = arith.constant dense<0.000000e+00> : vector<64x128xf32>
    %23 = tpu.matmul %22, %21, %cst_7 {dimension_numbers = #tpu.dot_dimension_numbers<[1], [0], [0], [1], [0, 0, 1, 1], [], []>} : vector<64x88xf32>, vector<88x128xf32>, vector<64x128xf32> -> vector<64x128xf32>
    %c0_8 = arith.constant 0 : index
    %c0_9 = arith.constant 0 : index
    %24 = vector.load %arg3[%c0_8, %c0_9] : memref<64x1xf32, #tpu.memory_space<vmem>>, vector<64x1xf32>
    %25 = vector.broadcast %24 : vector<64x1xf32> to vector<64x128xf32>
    %26 = arith.addf %23, %25 : vector<64x128xf32>
    %cst_10 = arith.constant 5.000000e-01 : f32
    %27 = vector.broadcast %cst_10 : f32 to vector<64x128xf32>
    %28 = arith.mulf %27, %26 : vector<64x128xf32>
    %cst_11 = arith.constant 5.000000e-01 : f32
    %29 = vector.broadcast %cst_11 : f32 to vector<64x128xf32>
    %30 = arith.mulf %29, %26 : vector<64x128xf32>
    %31 = math.tanh %30 : vector<64x128xf32>
    %cst_12 = arith.constant 1.000000e+00 : f32
    %32 = vector.broadcast %cst_12 : f32 to vector<64x128xf32>
    %33 = arith.addf %32, %31 : vector<64x128xf32>
    %34 = arith.mulf %28, %33 : vector<64x128xf32>
    %c0_13 = arith.constant 0 : index
    %c0_14 = arith.constant 0 : index
    %35 = vector.load %arg4[%c0_13, %c0_14] : memref<64x64xf32, #tpu.memory_space<vmem>>, vector<64x64xf32>
    %cst_15 = arith.constant dense<0.000000e+00> : vector<64x128xf32>
    %36 = tpu.matmul %35, %34, %cst_15 {dimension_numbers = #tpu.dot_dimension_numbers<[1], [0], [0], [1], [0, 0, 1, 1], [], []>} : vector<64x64xf32>, vector<64x128xf32>, vector<64x128xf32> -> vector<64x128xf32>
    %c0_16 = arith.constant 0 : index
    %c0_17 = arith.constant 0 : index
    %37 = vector.load %arg5[%c0_16, %c0_17] : memref<64x1xf32, #tpu.memory_space<vmem>>, vector<64x1xf32>
    %38 = vector.broadcast %37 : vector<64x1xf32> to vector<64x128xf32>
    %39 = arith.addf %36, %38 : vector<64x128xf32>
    %cst_18 = arith.constant 5.000000e-01 : f32
    %40 = vector.broadcast %cst_18 : f32 to vector<64x128xf32>
    %41 = arith.mulf %40, %39 : vector<64x128xf32>
    %cst_19 = arith.constant 5.000000e-01 : f32
    %42 = vector.broadcast %cst_19 : f32 to vector<64x128xf32>
    %43 = arith.mulf %42, %39 : vector<64x128xf32>
    %44 = math.tanh %43 : vector<64x128xf32>
    %cst_20 = arith.constant 1.000000e+00 : f32
    %45 = vector.broadcast %cst_20 : f32 to vector<64x128xf32>
    %46 = arith.addf %45, %44 : vector<64x128xf32>
    %47 = arith.mulf %41, %46 : vector<64x128xf32>
    %c0_21 = arith.constant 0 : index
    %c0_22 = arith.constant 0 : index
    %48 = vector.load %arg6[%c0_21, %c0_22] : memref<64x64xf32, #tpu.memory_space<vmem>>, vector<64x64xf32>
    %cst_23 = arith.constant dense<0.000000e+00> : vector<64x128xf32>
    %49 = tpu.matmul %48, %47, %cst_23 {dimension_numbers = #tpu.dot_dimension_numbers<[1], [0], [0], [1], [0, 0, 1, 1], [], []>} : vector<64x64xf32>, vector<64x128xf32>, vector<64x128xf32> -> vector<64x128xf32>
    %c0_24 = arith.constant 0 : index
    %c0_25 = arith.constant 0 : index
    %50 = vector.load %arg7[%c0_24, %c0_25] : memref<64x1xf32, #tpu.memory_space<vmem>>, vector<64x1xf32>
    %51 = vector.broadcast %50 : vector<64x1xf32> to vector<64x128xf32>
    %52 = arith.addf %49, %51 : vector<64x128xf32>
    %cst_26 = arith.constant 5.000000e-01 : f32
    %53 = vector.broadcast %cst_26 : f32 to vector<64x128xf32>
    %54 = arith.mulf %53, %52 : vector<64x128xf32>
    %cst_27 = arith.constant 5.000000e-01 : f32
    %55 = vector.broadcast %cst_27 : f32 to vector<64x128xf32>
    %56 = arith.mulf %55, %52 : vector<64x128xf32>
    %57 = math.tanh %56 : vector<64x128xf32>
    %cst_28 = arith.constant 1.000000e+00 : f32
    %58 = vector.broadcast %cst_28 : f32 to vector<64x128xf32>
    %59 = arith.addf %58, %57 : vector<64x128xf32>
    %60 = arith.mulf %54, %59 : vector<64x128xf32>
    %c0_29 = arith.constant 0 : index
    %c0_30 = arith.constant 0 : index
    %61 = vector.load %arg8[%c0_29, %c0_30] : memref<64x64xf32, #tpu.memory_space<vmem>>, vector<64x64xf32>
    %cst_31 = arith.constant dense<0.000000e+00> : vector<64x128xf32>
    %62 = tpu.matmul %61, %60, %cst_31 {dimension_numbers = #tpu.dot_dimension_numbers<[1], [0], [0], [1], [0, 0, 1, 1], [], []>} : vector<64x64xf32>, vector<64x128xf32>, vector<64x128xf32> -> vector<64x128xf32>
    %c0_32 = arith.constant 0 : index
    %c0_33 = arith.constant 0 : index
    %63 = vector.load %arg9[%c0_32, %c0_33] : memref<64x1xf32, #tpu.memory_space<vmem>>, vector<64x1xf32>
    %64 = vector.broadcast %63 : vector<64x1xf32> to vector<64x128xf32>
    %65 = arith.addf %62, %64 : vector<64x128xf32>
    %cst_34 = arith.constant 5.000000e-01 : f32
    %66 = vector.broadcast %cst_34 : f32 to vector<64x128xf32>
    %67 = arith.mulf %66, %65 : vector<64x128xf32>
    %cst_35 = arith.constant 5.000000e-01 : f32
    %68 = vector.broadcast %cst_35 : f32 to vector<64x128xf32>
    %69 = arith.mulf %68, %65 : vector<64x128xf32>
    %70 = math.tanh %69 : vector<64x128xf32>
    %cst_36 = arith.constant 1.000000e+00 : f32
    %71 = vector.broadcast %cst_36 : f32 to vector<64x128xf32>
    %72 = arith.addf %71, %70 : vector<64x128xf32>
    %73 = arith.mulf %67, %72 : vector<64x128xf32>
    %c0_37 = arith.constant 0 : index
    %c0_38 = arith.constant 0 : index
    %74 = vector.load %arg10[%c0_37, %c0_38] : memref<64x1xf32, #tpu.memory_space<vmem>>, vector<64x1xf32>
    %75 = vector.broadcast %74 : vector<64x1xf32> to vector<64x128xf32>
    %76 = arith.mulf %73, %75 : vector<64x128xf32>
    %cst_39 = arith.constant dense<0.000000e+00> : vector<128xf32>
    %77 = vector.multi_reduction <add>, %76, %cst_39 [0] : vector<64x128xf32> to vector<128xf32>
    %78 = vector.shape_cast %77 : vector<128xf32> to vector<1x128xf32>
    %c0_40 = arith.constant 0 : index
    %c0_41 = arith.constant 0 : index
    %79 = vector.load %arg11[%c0_40, %c0_41] : memref<1x1xf32, #tpu.memory_space<vmem>>, vector<1x1xf32>
    %80 = vector.broadcast %79 : vector<1x1xf32> to vector<1x128xf32>
    %81 = arith.addf %78, %80 : vector<1x128xf32>
    %c0_42 = arith.constant 0 : index
    %c0_43 = arith.constant 0 : index
    %82 = vector.load %arg12[%c0_42, %c0_43] : memref<1x128xf32, #tpu.memory_space<vmem>>, vector<1x128xf32>
    tpu.vector_store %arg12[%c0_42, %c0_43], %81 {strides = array<i32>} : memref<1x128xf32, #tpu.memory_space<vmem>>, vector<1x128xf32>,
    return
  }
  func.func @transform_0(%arg0: i32) -> (i32, i32) {
    %c0_i32 = arith.constant 0 : i32
    %c0_i32_0 = arith.constant 0 : i32
    return %c0_i32, %arg0 : i32, i32
  }
  func.func @transform_1(%arg0: i32) -> (i32, i32) {
    %c0_i32 = arith.constant 0 : i32
    %c0_i32_0 = arith.constant 0 : i32
    %c0_i32_1 = arith.constant 0 : i32
    return %c0_i32, %c0_i32_0 : i32, i32
  }
  func.func @transform_2(%arg0: i32) -> (i32, i32) {
    %c0_i32 = arith.constant 0 : i32
    %c0_i32_0 = arith.constant 0 : i32
    %c0_i32_1 = arith.constant 0 : i32
    return %c0_i32, %c0_i32_0 : i32, i32
  }
  func.func @transform_3(%arg0: i32) -> (i32, i32) {
    %c0_i32 = arith.constant 0 : i32
    %c0_i32_0 = arith.constant 0 : i32
    %c0_i32_1 = arith.constant 0 : i32
    return %c0_i32, %c0_i32_0 : i32, i32
  }
  func.func @transform_4(%arg0: i32) -> (i32, i32) {
    %c0_i32 = arith.constant 0 : i32
    %c0_i32_0 = arith.constant 0 : i32
    %c0_i32_1 = arith.constant 0 : i32
    return %c0_i32, %c0_i32_0 : i32, i32
  }
  func.func @transform_5(%arg0: i32) -> (i32, i32) {
    %c0_i32 = arith.constant 0 : i32
    %c0_i32_0 = arith.constant 0 : i32
    %c0_i32_1 = arith.constant 0 : i32
    return %c0_i32, %c0_i32_0 : i32, i32
  }
  func.func @transform_6(%arg0: i32) -> (i32, i32) {
    %c0_i32 = arith.constant 0 : i32
    %c0_i32_0 = arith.constant 0 : i32
    %c0_i32_1 = arith.constant 0 : i32
    return %c0_i32, %c0_i32_0 : i32, i32
  }
  func.func @transform_7(%arg0: i32) -> (i32, i32) {
    %c0_i32 = arith.constant 0 : i32
    %c0_i32_0 = arith.constant 0 : i32
    %c0_i32_1 = arith.constant 0 : i32
    return %c0_i32, %c0_i32_0 : i32, i32
  }
  func.func @transform_8(%arg0: i32) -> (i32, i32) {
    %c0_i32 = arith.constant 0 : i32
    %c0_i32_0 = arith.constant 0 : i32
    %c0_i32_1 = arith.constant 0 : i32
    return %c0_i32, %c0_i32_0 : i32, i32
  }
  func.func @transform_9(%arg0: i32) -> (i32, i32) {
    %c0_i32 = arith.constant 0 : i32
    %c0_i32_0 = arith.constant 0 : i32
    %c0_i32_1 = arith.constant 0 : i32
    return %c0_i32, %c0_i32_0 : i32, i32
  }
  func.func @transform_10(%arg0: i32) -> (i32, i32) {
    %c0_i32 = arith.constant 0 : i32
    %c0_i32_0 = arith.constant 0 : i32
    %c0_i32_1 = arith.constant 0 : i32
    return %c0_i32, %c0_i32_0 : i32, i32
  }
  func.func @transform_11(%arg0: i32) -> (i32, i32) {
    %c0_i32 = arith.constant 0 : i32
    %c0_i32_0 = arith.constant 0 : i32
    return %c0_i32, %arg0 : i32, i32
  }
}

</mosaic_0001>

<bundles_post_ra>
// kernel: nn_forward.1
= control target key start
LH: loop header
LB: loop body
LE: loop exit
PB: predicated region body
PF: predicated region fallthrough
CT: control target
= control target key end

     0   :  { %s2952_s19 = smov 0   ;;  %s3678_s0 = inlined_call_operand.vmem [shape: f32[8,256], index: 0, kind: input, shape index: {}]   ;;  %s3679_s1 = inlined_call_operand.vmem [shape: f32[64,88], index: 1, kind: input, shape index: {}]   ;;  %s3680_s2 = inlined_call_operand.vmem [shape: f32[64,1], index: 2, kind: input, shape index: {}]   ;;  %s3681_s3 = inlined_call_operand.vmem [shape: f32[64,64], index: 3, kind: input, shape index: {}]   ;;  %s3682_s4 = inlined_call_operand.vmem [shape: f32[64,1], index: 4, kind: input, shape index: {}]   ;;  %s3683_s5 = inlined_call_operand.vmem [shape: f32[64,64], index: 5, kind: input, shape index: {}]   ;;  %s3684_s6 = inlined_call_operand.vmem [shape: f32[64,1], index: 6, kind: input, shape index: {}]   ;;  %s3685_s7 = inlined_call_operand.vmem [shape: f32[64,64], index: 7, kind: input, shape index: {}]   ;;  %s3686_s8 = inlined_call_operand.vmem [shape: f32[64,1], index: 8, kind: input, shape index: {}]   ;;  %s3687_s9 = inlined_call_operand.vmem [shape: f32[64,1], index: 9, kind: input, shape index: {}]   ;;  %s3688_s10 = inlined_call_operand.<no memory space> [shape: f32[1,1], index: 10, kind: input, shape index: {}]   ;;  %s3689_s11 = inlined_call_operand.vmem [shape: f32[1,256], index: 11, kind: output, shape index: {}]  }
   0x1   :  { %v16_v0 = vstv %s3688_s10 }
   0x2   :  { %17 = vst [vmem:[#allocation2] sm:$0x1] %v16_v0 }
   0x3 LB: > { %s2420_s20 = sadd.s32 4294967295, %s2880_s19   ;;  %p2424_p0 = scmp.ge.s32.totalorder %s2880_s19, 1  ;;  %s2880_s19 = sphi %s2952_s19, %s23_s19  }
   0x4   : > { %p338_p1 = scmp.lt.s32.totalorder %s2880_s19, 3 }
   0x6   : > { %p339_p2 = pnand %p2424_p0, %p338_p1 }
   0x7   : > { %p375_p3 = scmp.lt.s32.totalorder (!%p339_p2), %s2420_s20, 1  ;;  %v2882_v29 = vmov (!%p339_p2), 683565275   ;;  %v2883_v31 = vmov (!%p339_p2), 2475754826  }
   0x8   : > { %342 = sbr.rel (%p339_p2) target bundleno = 1218 (0x4c2), region = 64  ;;  %v2884_v33 = vmov (!%p339_p2), 2131351028   ;;  %v2885_v35 = vmov (!%p339_p2), 2102212464  }
   0x9   : > { %v2886_v37 = vmov (!%p339_p2), 920167782   ;;  %v2887_v44 = vmov (!%p339_p2), 1326507024  }
   0xf   : > { %s3699_s20 = smov (!%p375_p3, %s2420_s20), 1 }
  0x10   : > { %s2425_s10 = sshll.u32 %s3699_s20, 3  ;;  %s381_s26 = scalar_lea.vmem %s3689_s11, %s3699_s20 }
  0x11   : > { %s378_s23 = scalar_lea.vmem %s3678_s0, %s2425_s10 }
  0x12   : > { %v2966_v1 = vld [vmem:[%s378_s23] sm:$0xff] }
  0x13   : > { %v387_v2 = vand.u32 2147483647, %v2966_v1  ;;  %v390_v3 = vand.u32 2139095040, %v2966_v1  ;;  %v2971_v4 = vmul.f32 2.0, %v2966_v1  ;;  %v2974_v5 = vmul.f32 4.0, %v2966_v1 }
  0x14   : > { %v2985_v24 = vmul.f32 8.0, %v2966_v1  ;;  %vm389_vm13 = vcmp.lt.s32.totalorder %v2966_v1, 0 }
  0x15   : > { %v391_v6 = vshrl.u32 %v390_v3, 23  ;;  %v394_v7 = vand.u32 8388607, %v387_v2  ;;  %v491_v8 = vand.u32 2147483647, %v2971_v4  ;;  %v494_v9 = vand.u32 2139095040, %v2971_v4 }
  0x16   : > { %v598_v13 = vand.u32 2139095040, %v2974_v5  ;;  %v595_v23 = vand.u32 2147483647, %v2974_v5  ;;  %vm3089_vm14 = vcmp.le.f32.partialorder %v387_v2, 0.7853982 }
  0x17   : > { %v2426_v10 = vadd.s32 4294967169, %v391_v6  ;;  %v495_v11 = vshrl.u32 %v494_v9, 23  ;;  %v498_v12 = vand.u32 8388607, %v491_v8  ;;  %v395_v15 = vor.u32 8388608, %v394_v7 }
  0x18   : > { %v599_v18 = vshrl.u32 %v598_v13, 23 }
  0x19   : > { %v397_v14 = vadd.s32 1, %v2426_v10  ;;  %v2430_v16 = vadd.s32 4294967169, %v495_v11  ;;  %v499_v17 = vor.u32 8388608, %v498_v12  ;;  %v2987_v25 = vshll.u32 %v395_v15, 8 }
  0x1a   : > { %v2991_v27 = vadd.s32 4294967169, %v599_v18 }
  0x1b   : > { %vm398_vm0 = vcmp.gt.s32.totalorder %v397_v14, 0  ;;  %v501_v20 = vadd.s32 1, %v2430_v16  ;;  %v2989_v26 = vshll.u32 %v499_v17, 8 }
  0x1c   : > { %v399_v19 = vsel %vm398_vm0, %v397_v14, 0 }
  0x1d   : > { %v400_v21 = vshrl.u32 %v399_v19, 5  ;;  %v401_v22 = vand.u32 31, %v399_v19  ;;  %vm502_vm1 = vcmp.gt.s32.totalorder %v501_v20, 0 }
  0x1e   : > { %v503_v49 = vsel %vm502_vm1, %v501_v20, 0 }
  0x1f   : > { %v402_v28 = vsub.s32 32, %v401_v22  ;;  %v404_v30 = vshll.u32 %v2882_v29, %v401_v22  ;;  %v407_v32 = vshll.u32 %v2883_v31, %v401_v22  ;;  %v410_v34 = vshll.u32 %v2884_v33, %v401_v22 }
  0x20   : > { %v413_v36 = vshll.u32 %v2885_v35, %v401_v22  ;;  %v416_v38 = vshll.u32 %v2886_v37, %v401_v22  ;;  %vm419_vm2 = vcmp.lt.s32.totalorder %v400_v21, 1  ;;  %vm420_vm3 = vcmp.lt.s32.totalorder %v400_v21, 2 }
  0x21   : > { %v403_v39 = vshrl.u32 %v2882_v29, %v402_v28  ;;  %v405_v40 = vshrl.u32 %v2883_v31, %v402_v28  ;;  %v408_v41 = vshrl.u32 %v2884_v33, %v402_v28  ;;  %v411_v42 = vshrl.u32 %v2885_v35, %v402_v28 }
  0x22   : > { %v414_v43 = vshrl.u32 %v2886_v37, %v402_v28  ;;  %v417_v45 = vshrl.u32 %v2887_v44, %v402_v28  ;;  %vm421_vm4 = vcmp.lt.s32.totalorder %v400_v21, 3  ;;  %vm422_vm5 = vcmp.lt.s32.totalorder %v400_v21, 4 }
  0x23   : > { %v406_v46 = vor.u32 %v405_v40, %v404_v30  ;;  %v409_v47 = vor.u32 %v408_v41, %v407_v32  ;;  %v412_v48 = vor.u32 %v411_v42, %v410_v34  ;;  %v504_v52 = vshrl.u32 %v503_v49, 5 }
  0x24   : > { %v415_v50 = vor.u32 %v414_v43, %v413_v36  ;;  %v418_v51 = vor.u32 %v417_v45, %v416_v38  ;;  %v505_v53 = vand.u32 31, %v503_v49  ;;  %v605_v36 = vadd.s32 1, %v2991_v27 }
  0x25   : > { %v423_v54 = vsel %vm419_vm2, %v403_v39, %v406_v46  ;;  %v424_v55 = vsel %vm422_vm5, %v412_v48, 2102212464  ;;  %v427_v56 = vsel %vm419_vm2, %v406_v46, %v409_v47  ;;  %v431_v57 = vsel %vm419_vm2, %v409_v47, %v412_v48 }
  0x26   : > { %v425_v58 = vsel %vm421_vm4, %v409_v47, %v424_v55  ;;  %v428_v59 = vsel %vm422_vm5, %v415_v50, 920167782  ;;  %v432_v60 = vsel %vm422_vm5, %v418_v51, 1326507024  ;;  %v506_v61 = vsub.s32 32, %v505_v53 }
  0x27   : > { %v426_v62 = vsel %vm420_vm3, %v423_v54, %v425_v58  ;;  %v429_v63 = vsel %vm421_vm4, %v412_v48, %v428_v59  ;;  %v433_v0 = vsel %vm421_vm4, %v415_v50, %v432_v60  ;;  %v508_v3 = vshll.u32 %v2882_v29, %v505_v53 }
  0x28   : > { %v430_v6 = vsel %vm420_vm3, %v427_v56, %v429_v63  ;;  %v434_v7 = vsel %vm420_vm3, %v431_v57, %v433_v0  ;;  %v442_v9 = vmul.u32 %v2987_v25, %v426_v62  ;;  %v507_v10 = vshrl.u32 %v2882_v29, %v506_v61 }
  0x29   : > { %v3018_v11 = vmul.u32.u64.low %v2987_v25, %v434_v7  ;;  %v3019_v12 = vmul.u32.u64.high %v2987_v25, %v434_v7, %v3018_v11  ;;  %v3022_v13 = vmul.u32.u64.low %v2987_v25, %v430_v6  ;;  %v3023_v14 = vmul.u32.u64.high %v2987_v25, %v430_v6, %v3022_v13 }
  0x2a   : > { %v509_v15 = vshrl.u32 %v2883_v31, %v506_v61  ;;  %v511_v16 = vshll.u32 %v2883_v31, %v505_v53  ;;  %v512_v17 = vshrl.u32 %v2884_v33, %v506_v61  ;;  %v514_v18 = vshll.u32 %v2884_v33, %v505_v53 }
  0x2b   : > { %v515_v19 = vshrl.u32 %v2885_v35, %v506_v61  ;;  %v517_v20 = vshll.u32 %v2885_v35, %v505_v53  ;;  %v518_v21 = vshrl.u32 %v2886_v37, %v506_v61  ;;  %v520_v22 = vshll.u32 %v2886_v37, %v505_v53 }
  0x2c   : > { %v510_v28 = vor.u32 %v509_v15, %v508_v3  ;;  %v513_v30 = vor.u32 %v512_v17, %v511_v16  ;;  %v521_v25 = vshrl.u32 %v2887_v44, %v506_v61  ;;  %vm523_vm6 = vcmp.lt.s32.totalorder %v504_v52, 1 }
  0x2d   : > { %vm444_vm7 = vc.u32 %v3019_v12, %v3022_v13  ;;  %v445_v32 = vadd.s32 1, %v3023_v14  ;;  %v516_v34 = vor.u32 %v515_v19, %v514_v18  ;;  %v519_v38 = vor.u32 %v518_v21, %v517_v20 }
  0x2e   : > { %v522_v39 = vor.u32 %v521_v25, %v520_v22  ;;  %vm524_vm8 = vcmp.lt.s32.totalorder %v504_v52, 2  ;;  %vm525_vm9 = vcmp.lt.s32.totalorder %v504_v52, 3  ;;  %vm526_vm10 = vcmp.lt.s32.totalorder %v504_v52, 4 }
  0x2f   : > { %v446_v40 = vsel %vm444_vm7, %v445_v32, %v3023_v14  ;;  %v527_v41 = vsel %vm523_vm6, %v507_v10, %v510_v28  ;;  %v531_v42 = vsel %vm523_vm6, %v510_v28, %v513_v30  ;;  %v528_v45 = vsel %vm526_vm10, %v516_v34, 2102212464 }
  0x30   : > { %v447_v43 = vadd.s32 %v446_v40, %v442_v9  ;;  %v532_v46 = vsel %vm526_vm10, %v519_v38, 920167782  ;;  %v535_v47 = vsel %vm523_vm6, %v513_v30, %v516_v34  ;;  %v529_v48 = vsel %vm525_vm9, %v513_v30, %v528_v45 }
  0x31   : > { %v533_v49 = vsel %vm525_vm9, %v516_v34, %v532_v46  ;;  %v536_v50 = vsel %vm526_vm10, %v522_v39, 1326507024  ;;  %vm606_vm11 = vcmp.gt.s32.totalorder %v605_v36, 0  ;;  %v602_v54 = vand.u32 8388607, %v595_v23 }
  0x32   : > { %v448_v27 = vadd.s32 536870912, %v447_v43  ;;  %v534_v51 = vsel %vm524_vm8, %v531_v42, %v533_v49  ;;  %v537_v53 = vsel %vm525_vm9, %v519_v38, %v536_v50  ;;  %v530_v55 = vsel %vm524_vm8, %v527_v41, %v529_v48 }
  0x33   : > { %v538_v56 = vsel %vm524_vm8, %v535_v47, %v537_v53  ;;  %v3047_v57 = vmul.u32.u64.low %v2989_v26, %v534_v51  ;;  %v3048_v58 = vmul.u32.u64.high %v2989_v26, %v534_v51, %v3047_v57  ;;  %v607_v62 = vsel %vm606_vm11, %v605_v36, 0 }
  0x34   : > { %v449_v59 = vshrl.u32 %v448_v27, 30  ;;  %v3052_v60 = vmul.u32.u64.low %v2989_v26, %v538_v56  ;;  %v3053_v61 = vmul.u32.u64.high %v2989_v26, %v538_v56, %v3052_v60  ;;  %v609_v63 = vand.u32 31, %v607_v62 }
  0x35   : > { %v546_v3 = vmul.u32 %v2989_v26, %v530_v55  ;;  %v699_v6 = vand.u32 2147483647, %v2985_v24  ;;  %v549_v52 = vadd.s32 1, %v3048_v58  ;;  %v603_v7 = vor.u32 8388608, %v602_v54 }
  0x36   : > { %v450_v0 = vshll.u32 %v449_v59, 30  ;;  %vm548_vm12 = vc.u32 %v3053_v61, %v3047_v57  ;;  %v610_v10 = vsub.s32 32, %v609_v63  ;;  %v702_v16 = vand.u32 2139095040, %v2985_v24 }
  0x37   : > { %v550_v11 = vsel %vm548_vm12, %v549_v52, %v3048_v58  ;;  %v3067_v26 = vand.u32 8388607, %v699_v6  ;;  %v443_v17 = vadd.s32 %v3022_v13, %v3019_v12  ;;  %v3070_v18 = vshll.u32 %v603_v7, 8 }
  0x38   : > { %v3058_v9 = vsub.s32 %v447_v43, %v450_v0  ;;  %v551_v15 = vadd.s32 %v550_v11, %v546_v3  ;;  %v3073_v19 = vmul.f32 16.0, %v2966_v1  ;;  %v612_v21 = vshll.u32 %v2882_v29, %v609_v63 }
  0x39   : > { %v613_v22 = vshrl.u32 %v2883_v31, %v610_v10  ;;  %v615_v28 = vshll.u32 %v2883_v31, %v609_v63  ;;  %v616_v25 = vshrl.u32 %v2884_v33, %v610_v10  ;;  %v618_v12 = vshll.u32 %v2884_v33, %v609_v63 }
  0x3a   : > { %v453_v14 = vsub.s32 0, %v3058_v9  ;;  %v552_v30 = vadd.s32 536870912, %v551_v15  ;;  %v619_v13 = vshrl.u32 %v2885_v35, %v610_v10  ;;  %v608_v34 = vshrl.u32 %v607_v62, 5 }
  0x3b   : > { %v703_v36 = vshrl.u32 %v702_v16, 23  ;;  %v707_v38 = vor.u32 8388608, %v3067_v26  ;;  %v621_v40 = vshll.u32 %v2885_v35, %v609_v63  ;;  %v622_v41 = vshrl.u32 %v2886_v37, %v610_v10 }
  0x3c   : > { %v2427_v20 = vmin.u32 %v453_v14, %v3058_v9  ;;  %v553_v39 = vshrl.u32 %v552_v30, 30  ;;  %v624_v42 = vshll.u32 %v2886_v37, %v609_v63  ;;  %v473_v46 = vsub.s32 4, %v449_v59 }
  0x3d   : > { %v611_v47 = vshrl.u32 %v2882_v29, %v610_v10  ;;  %v625_v48 = vshrl.u32 %v2887_v44, %v610_v10  ;;  %v614_v50 = vor.u32 %v613_v22, %v612_v21  ;;  %v617_v27 = vor.u32 %v616_v25, %v615_v28 }
  0x3e   : > { %v455_v32 = vclz %v2427_v20  ;;  %v554_v49 = vshll.u32 %v553_v39, 30  ;;  %v620_v51 = vor.u32 %v619_v13, %v618_v12  ;;  %v623_v53 = vor.u32 %v622_v41, %v621_v40 }
  0x3f   : > { %vm627_vm0 = vcmp.lt.s32.totalorder %v608_v34, 1  ;;  %vm629_vm1 = vcmp.lt.s32.totalorder %v608_v34, 3  ;;  %v626_v2 = vor.u32 %v625_v48, %v624_v42  ;;  %vm630_vm2 = vcmp.lt.s32.totalorder %v608_v34, 4 }
  0x40   : > { %v2428_v45 = vadd.s32 4294967294, %v455_v32  ;;  %v3095_v55 = vsub.s32 %v551_v15, %v554_v49  ;;  %vm493_vm3 = vcmp.lt.s32.totalorder %v2971_v4, 0  ;;  %v632_v62 = vsel %vm630_vm2, %v620_v51, 2102212464 }
  0x41   : > { %v474_v63 = vsel %vm389_vm13, %v473_v46, %v449_v59  ;;  %vm628_vm4 = vcmp.lt.s32.totalorder %v608_v34, 2  ;;  %v635_v3 = vsel %vm627_vm0, %v614_v50, %v617_v27  ;;  %v631_v10 = vsel %vm627_vm0, %v611_v47, %v614_v50 }
  0x42   : > { %vm2429_vm15 = vcmp.lt.s32.totalorder %v2428_v45, 0  ;;  %v557_v0 = vsub.s32 0, %v3095_v55  ;;  %v636_v11 = vsel %vm630_vm2, %v623_v53, 920167782  ;;  %vm3108_vm5 = vcmp.le.f32.partialorder %v491_v8, 0.7853982 }
  0x43   : > { %v458_v54 = vsel %vm2429_vm15, 0, %v2428_v45  ;;  %v633_v59 = vsel %vm629_vm1, %v617_v27, %v632_v62  ;;  %v637_v15 = vsel %vm629_vm1, %v620_v51, %v636_v11  ;;  %v639_v16 = vsel %vm627_vm0, %v617_v27, %v620_v51 }
  0x44   : > { %v459_v56 = vsub.s32 32, %v458_v54  ;;  %v460_v58 = vshll.u32 %v3058_v9, %v458_v54  ;;  %v463_v60 = vsub.s32 4294967266, %v458_v54  ;;  %v2431_v14 = vmin.u32 %v557_v0, %v3095_v55 }
  0x45   : > { %v638_v21 = vsel %vm628_vm4, %v635_v3, %v637_v15  ;;  %v640_v22 = vsel %vm630_vm2, %v626_v2, 1326507024  ;;  %v476_v8 = vsel %vm3089_vm14, 0, %v474_v63  ;;  %v547_v28 = vadd.s32 %v3047_v57, %v3053_v61 }
  0x46   : > { %v461_v52 = vshrl.u32 %v443_v17, %v459_v56  ;;  %v464_v7 = vadd.s32 127, %v463_v60  ;;  %v559_v30 = vclz %v2431_v14  ;;  %v577_v25 = vsub.s32 4, %v553_v39 }
  0x47   : > { %v634_v32 = vsel %vm628_vm4, %v631_v10, %v633_v59  ;;  %v641_v40 = vsel %vm629_vm1, %v623_v53, %v640_v22  ;;  %v3126_v45 = vmul.u32.u64.low %v3070_v18, %v638_v21  ;;  %v3127_v46 = vmul.u32.u64.high %v3070_v18, %v638_v21, %v3126_v45 }
  0x48   : > { %v462_v17 = vor.u32 %v461_v52, %v460_v58  ;;  %v465_v20 = vshll.u32 %v464_v7, 23  ;;  %v2432_v41 = vadd.s32 4294967294, %v559_v30  ;;  %v642_v42 = vsel %vm628_vm4, %v639_v16, %v641_v40 }
  0x49   : > { %v3131_v48 = vmul.u32.u64.low %v3070_v18, %v642_v42  ;;  %v3132_v57 = vmul.u32.u64.high %v3070_v18, %v642_v42, %v3131_v48  ;;  %v2438_v61 = vadd.s32 4294967169, %v703_v36  ;;  %v480_v49 = vadd.s32 3, %v476_v8 }
  0x4a   : > { %v466_v12 = vor.u32 4788187, %v465_v20  ;;  %v469_v13 = vcvt.s32.f32 %v462_v17  ;;  %v3134_v50 = vand.u32 3, %v476_v8  ;;  %vm2433_vm6 = vcmp.lt.s32.totalorder %v2432_v41, 0 }
  0x4b   : > { %v578_v27 = vsel %vm493_vm3, %v577_v25, %v553_v39  ;;  %v562_v51 = vsel %vm2433_vm6, 0, %v2432_v41  ;;  %v650_v53 = vmul.u32 %v3070_v18, %v634_v32  ;;  %v709_v54 = vadd.s32 1, %v2438_v61 }
  0x4c   : > { %v467_v47 = vand.u32 2147483647, %v466_v12  ;;  %v563_v2 = vsub.s32 32, %v562_v51  ;;  %v564_v56 = vshll.u32 %v3095_v55, %v562_v51  ;;  %v567_v58 = vsub.s32 4294967266, %v562_v51 }
  0x4d   : > { %v653_v60 = vadd.s32 1, %v3127_v46  ;;  %v3143_v36 = vsel %vm3108_vm5, 0, %v578_v27  ;;  %vm652_vm7 = vc.u32 %v3132_v57, %v3126_v45  ;;  %vm710_vm8 = vcmp.gt.s32.totalorder %v709_v54, 0 }
  0x4e   : > { %v470_v34 = vmul.f32 %v469_v13, %v467_v47  ;;  %v565_v39 = vshrl.u32 %v547_v28, %v563_v2  ;;  %v568_v63 = vadd.s32 127, %v567_v58  ;;  %vm597_vm9 = vcmp.lt.s32.totalorder %v2974_v5, 0 }
  0x4f   : > { %v654_v18 = vsel %vm652_vm7, %v653_v60, %v3127_v46  ;;  %v711_v0 = vsel %vm710_vm8, %v709_v54, 0  ;;  %v3151_v3 = vand.u32 3, %v480_v49  ;;  %v803_v59 = vand.u32 2147483647, %v3073_v19 }
  0x50   : > { %v471_v62 = vxor.u32 2147483648, %v470_v34  ;;  %v655_v52 = vadd.s32 %v654_v18, %v650_v53  ;;  %v713_v7 = vand.u32 31, %v711_v0  ;;  %v566_v11 = vor.u32 %v565_v39, %v564_v56 }
  0x51   : > { %v569_v14 = vshll.u32 %v568_v63, 23  ;;  %v3158_v15 = vadd.s32 3, %v3143_v36  ;;  %vm3162_vm10 = vcmp.le.f32.partialorder %v595_v23, 0.7853982  ;;  %v3168_v22 = vshll.u32 %v707_v38, 8 }
  0x52   : > { %v472_v55 = vsel %vm389_vm13, %v471_v62, %v470_v34  ;;  %v656_v17 = vadd.s32 536870912, %v655_v52  ;;  %v714_v20 = vsub.s32 32, %v713_v7  ;;  %v573_v43 = vcvt.s32.f32 %v566_v11 }
  0x53   : > { %v475_v10 = vsel %vm3089_vm14, %v2966_v1, %v472_v55  ;;  %v570_v21 = vor.u32 4788187, %v569_v14  ;;  %vm486_vm11 = vcmp.eq.s32.totalorder %v3151_v3, 2  ;;  %vm1005_vm12 = vcmp.eq.s32.totalorder %v3134_v50, 2 }
  0x54   : > { %2790 = vcosq.f32 %v475_v10  ;;  %v657_v8 = vshrl.u32 %v656_v17, 30  ;;  %v716_v28 = vshll.u32 %v2882_v29, %v713_v7  ;;  %v719_v23 = vshll.u32 %v2883_v31, %v713_v7 }
  0x55   : > { %2792 = vsinq.f32 %v475_v10  ;;  %v806_v30 = vand.u32 2139095040, %v3073_v19  ;;  %vm483_vm13 = vcmp.eq.s32.totalorder %v3151_v3, 0  ;;  %vm1002_vm14 = vcmp.eq.s32.totalorder %v3134_v50, 0 }
  0x56   : > { %v571_v25 = vand.u32 2147483647, %v570_v21  ;;  %v717_v26 = vshrl.u32 %v2883_v31, %v714_v20  ;;  %v720_v38 = vshrl.u32 %v2884_v33, %v714_v20  ;;  %v722_v12 = vshll.u32 %v2884_v33, %v713_v7 }
  0x57   : > { %vm482_vm15 = vcmp.lt.s32.totalorder %v3151_v3, 2  ;;  %vm1001_vm0 = vcmp.lt.s32.totalorder %v3134_v50, 2  ;;  %v658_v13 = vshll.u32 %v657_v8, 30  ;;  %v681_v32 = vsub.s32 4, %v657_v8 }
  0x58   : > { %v723_v40 = vshrl.u32 %v2885_v35, %v714_v20  ;;  %v725_v41 = vshll.u32 %v2885_v35, %v713_v7  ;;  %vm479_vm1 = vweird.f32 %v2966_v1  ;;  %v574_v42 = vmul.f32 %v573_v43, %v571_v25 }
  0x59   : > { %v651_v46 = vadd.s32 %v3126_v45, %v3132_v57  ;;  %v712_v47 = vshrl.u32 %v711_v0, 5  ;;  %v726_v48 = vshrl.u32 %v2886_v37, %v714_v20  ;;  %v3188_v61 = vsub.s32 %v655_v52, %v658_v13 }
  0x5a   : > { %v682_v49 = vsel %vm597_vm9, %v681_v32, %v657_v8  ;;  %v728_v27 = vshll.u32 %v2886_v37, %v713_v7  ;;  %v729_v34 = vshrl.u32 %v2887_v44, %v714_v20  ;;  %v575_v51 = vxor.u32 2147483648, %v574_v42 }
  0x5b   : > { %v715_v53 = vshrl.u32 %v2882_v29, %v714_v20  ;;  %v718_v54 = vor.u32 %v717_v26, %v716_v28  ;;  %v807_v2 = vshrl.u32 %v806_v30, 23  ;;  %v661_v56 = vsub.s32 0, %v3188_v61 }
  0x5c   : > { %v721_v45 = vor.u32 %v720_v38, %v719_v23  ;;  %v724_v57 = vor.u32 %v723_v40, %v722_v12  ;;  %v727_v58 = vor.u32 %v726_v48, %v725_v41  ;;  %v576_v60 = vsel %vm493_vm3, %v575_v51, %v574_v42 }
  0x5d   : > { %v3200_v62 = vsel %vm3162_vm10, 0, %v682_v49  ;;  %vm731_vm2 = vcmp.lt.s32.totalorder %v712_v47, 1  ;;  %vm734_vm4 = vcmp.lt.s32.totalorder %v712_v47, 4  ;;  %v579_v63 = vsel %vm3108_vm5, %v2971_v4, %v576_v60 }
  0x5e   : > { %v2791_v39 = vpop.eup %2790  ;;  %v2435_v18 = vmin.u32 %v661_v56, %v3188_v61  ;;  %v730_v0 = vor.u32 %v729_v34, %v728_v27  ;;  %vm732_vm6 = vcmp.lt.s32.totalorder %v712_v47, 2  ;;  %2794 = vcosq.f32 %v579_v63 }
  0x5f   : > { %v2793_v55 = vpop.eup %2792  ;;  %v487_v52 = vxor.u32 2147483648, %v2791_v39  ;;  %vm733_vm7 = vcmp.lt.s32.totalorder %v712_v47, 3  ;;  %v736_v7 = vsel %vm734_vm4, %v724_v57, 2102212464  ;;  %2796 = vsinq.f32 %v579_v63 }
  0x60   : > { %v484_v10 = vxor.u32 2147483648, %v2793_v55  ;;  %v663_v11 = vclz %v2435_v18  ;;  %v740_v14 = vsel %vm734_vm4, %v727_v58, 920167782  ;;  %v735_v20 = vsel %vm731_vm2, %v715_v53, %v718_v54 }
  0x61   : > { %v488_v17 = vsel %vm486_vm11, %v487_v52, %v2793_v55  ;;  %v1007_v9 = vsel %vm1005_vm12, %v487_v52, %v2793_v55  ;;  %v739_v21 = vsel %vm731_vm2, %v718_v54, %v721_v45  ;;  %v737_v23 = vsel %vm733_vm7, %v721_v45, %v736_v7 }
  0x62   : > { %v485_v43 = vsel %vm483_vm13, %v2791_v39, %v484_v10  ;;  %v1004_v8 = vsel %vm1002_vm14, %v2791_v39, %v484_v10  ;;  %v2436_v28 = vadd.s32 4294967294, %v663_v11  ;;  %v741_v26 = vsel %vm733_vm7, %v724_v57, %v740_v14 }
  0x63   : > { %v489_v30 = vsel %vm482_vm15, %v485_v43, %v488_v17  ;;  %v1008_v25 = vsel %vm1001_vm0, %v1004_v8, %v1007_v9  ;;  %v743_v38 = vsel %vm731_vm2, %v721_v45, %v724_v57  ;;  %v742_v32 = vsel %vm732_vm6, %v739_v21, %v741_v26 }
  0x64   : > { %v490_v12 = vsel %vm479_vm1, nan, %v489_v30  ;;  %v3229_v13 = vsel %vm479_vm1, nan, %v1008_v25  ;;  %vm2437_vm3 = vcmp.lt.s32.totalorder %v2436_v28, 0  ;;  %v738_v50 = vsel %vm732_vm6, %v735_v20, %v737_v23 }
  0x65   : > { %v2685_v3 = vpack.c.bf16 %v490_v12, %v2966_v1  ;;  %v666_v40 = vsel %vm2437_vm3, 0, %v2436_v28  ;;  %v744_v41 = vsel %vm734_vm4, %v730_v0, 1326507024  ;;  %v2442_v1 = vadd.s32 4294967169, %v807_v2 }
  0x66   : > { %v667_v42 = vsub.s32 32, %v666_v40  ;;  %v668_v48 = vshll.u32 %v3188_v61, %v666_v40  ;;  %v671_v49 = vsub.s32 4294967266, %v666_v40  ;;  %v745_v27 = vsel %vm733_vm7, %v727_v58, %v744_v41 }
  0x67   : > { %2686 = vmatprep.subr.bf16.mxu0 %v2685_v3  ;;  %v746_v34 = vsel %vm732_vm6, %v743_v38, %v745_v27  ;;  %v3239_v51 = vmul.u32.u64.low %v3168_v22, %v742_v32  ;;  %v3240_v53 = vmul.u32.u64.high %v3168_v22, %v742_v32, %v3239_v51  ;;  %v3250_v58 = vand.u32 3, %v3158_v15 }
  0x68   : > { %2688 = vmatpush3.bf16.msra.mxu0 %v2685_v3  ;;  %v669_v54 = vshrl.u32 %v651_v46, %v667_v42  ;;  %v672_v56 = vadd.s32 127, %v671_v49  ;;  %v3244_v45 = vmul.u32.u64.low %v3168_v22, %v746_v34  ;;  %v3245_v57 = vmul.u32.u64.high %v3168_v22, %v746_v34, %v3244_v45  ;;  %v3247_v61 = vpop.eup %2794 }
  0x69   : > { %v813_v47 = vadd.s32 1, %v2442_v1  ;;  %v3252_v60 = vpop.eup %2796  ;;  %v688_v18 = vadd.s32 3, %v3200_v62  ;;  %v754_v2 = vmul.u32 %v3168_v22, %v738_v50  ;;  %v757_v46 = vadd.s32 1, %v3240_v53 }
  0x6a   : > { %v670_v39 = vor.u32 %v669_v54, %v668_v48  ;;  %v673_v63 = vshll.u32 %v672_v56, 23  ;;  %v810_v0 = vand.u32 8388607, %v803_v59  ;;  %v588_v55 = vxor.u32 2147483648, %v3252_v60 }
  0x6b   : > { %vm814_vm5 = vcmp.gt.s32.totalorder %v813_v47, 0  ;;  %v591_v15 = vxor.u32 2147483648, %v3247_v61  ;;  %vm587_vm8 = vcmp.eq.s32.totalorder %v3250_v58, 0  ;;  %vm590_vm11 = vcmp.eq.s32.totalorder %v3250_v58, 2 }
  0x6c   : > { %v674_v52 = vor.u32 4788187, %v673_v63  ;;  %v677_v7 = vcvt.s32.f32 %v670_v39  ;;  %vm756_vm12 = vc.u32 %v3245_v57, %v3239_v51  ;;  %v815_v22 = vsel %vm814_vm5, %v813_v47, 0 }
  0x6d   : > { %vm586_vm13 = vcmp.lt.s32.totalorder %v3250_v58, 2  ;;  %v758_v11 = vsel %vm756_vm12, %v757_v46, %v3240_v53  ;;  %v3267_v14 = vshrl.u32 %v815_v22, 5  ;;  %v3269_v17 = vand.u32 3, %v688_v18 }
  0x6e   : > { %v675_v10 = vand.u32 2147483647, %v674_v52  ;;  %v759_v9 = vadd.s32 %v758_v11, %v754_v2  ;;  %v817_v20 = vand.u32 31, %v815_v22  ;;  %v3272_v21 = vand.u32 3, %v3143_v36 }
  0x6f   : > { %v589_v43 = vsel %vm587_vm8, %v3247_v61, %v588_v55  ;;  %v592_v8 = vsel %vm590_vm11, %v591_v15, %v3252_v60  ;;  %v811_v23 = vor.u32 8388608, %v810_v0  ;;  %vm835_vm14 = vcmp.lt.s32.totalorder %v3267_v14, 1 }
  0x70   : > { %v678_v28 = vmul.f32 %v677_v7, %v675_v10  ;;  %v760_v30 = vadd.s32 536870912, %v759_v9  ;;  %v818_v25 = vsub.s32 32, %v817_v20  ;;  %v820_v26 = vshll.u32 %v2882_v29, %v817_v20 }
  0x71   : > { %vm583_vm15 = vweird.f32 %v2971_v4  ;;  %v823_v38 = vshll.u32 %v2883_v31, %v817_v20  ;;  %v826_v12 = vshll.u32 %v2884_v33, %v817_v20  ;;  %v829_v32 = vshll.u32 %v2885_v35, %v817_v20 }
  0x72   : > { %v679_v36 = vxor.u32 2147483648, %v678_v28  ;;  %v3286_v3 = vshrl.u32 %v760_v30, 30  ;;  %v821_v40 = vshrl.u32 %v2883_v31, %v818_v25  ;;  %v824_v50 = vshrl.u32 %v2884_v33, %v818_v25 }
  0x73   : > { %v832_v41 = vshll.u32 %v2886_v37, %v817_v20  ;;  %v827_v48 = vshrl.u32 %v2885_v35, %v818_v25  ;;  %v830_v49 = vshrl.u32 %v2886_v37, %v818_v25  ;;  %v833_v27 = vshrl.u32 %v2887_v44, %v818_v25 }
  0x74   : > { %v680_v42 = vsel %vm597_vm9, %v679_v36, %v678_v28  ;;  %v762_v53 = vshll.u32 %v3286_v3, 30  ;;  %v819_v31 = vshrl.u32 %v2882_v29, %v818_v25  ;;  %v822_v33 = vor.u32 %v821_v40, %v820_v26  ;;  %v1422_v36 = vld [vmem:[%s3679_s1] sm:$0xff] }
  0x75   : > { %v683_v34 = vsel %vm3162_vm10, %v2974_v5, %v680_v42  ;;  %v825_v1 = vor.u32 %v824_v50, %v823_v38  ;;  %v828_v54 = vor.u32 %v827_v48, %v826_v12  ;;  %v831_v56 = vor.u32 %v830_v49, %v829_v32 }
  0x76   : > { %2798 = vcosq.f32 %v683_v34  ;;  %v3301_v45 = vsub.s32 %v759_v9, %v762_v53  ;;  %v834_v35 = vor.u32 %v833_v27, %v832_v41  ;;  %vm837_vm9 = vcmp.lt.s32.totalorder %v3267_v14, 3 }
  0x77   : > { %2800 = vsinq.f32 %v683_v34  ;;  %vm836_vm0 = vcmp.lt.s32.totalorder %v3267_v14, 2  ;;  %vm838_vm1 = vcmp.lt.s32.totalorder %v3267_v14, 4  ;;  %v843_v37 = vsel %vm835_vm14, %v822_v33, %v825_v1 }
  0x78   : > { %v851_v44 = vshll.u32 %v811_v23, 8  ;;  %v593_v29 = vsel %vm586_vm13, %v589_v43, %v592_v8  ;;  %vm691_vm10 = vcmp.eq.s32.totalorder %v3269_v17, 0  ;;  %v765_v16 = vsub.s32 0, %v3301_v45 }
  0x79   : > { %v840_v47 = vsel %vm838_vm1, %v828_v54, 2102212464  ;;  %v844_v39 = vsel %vm838_vm1, %v831_v56, 920167782  ;;  %vm690_vm2 = vcmp.lt.s32.totalorder %v3269_v17, 2  ;;  %v839_v63 = vsel %vm835_vm14, %v819_v31, %v822_v33 }
  0x7a   : > { %v841_v18 = vsel %vm837_vm9, %v825_v1, %v840_v47  ;;  %v845_v2 = vsel %vm837_vm9, %v828_v54, %v844_v39  ;;  %v848_v46 = vsel %vm838_vm1, %v834_v35, 1326507024  ;;  %vm687_vm4 = vweird.f32 %v2974_v5  ;;  %v1431_v47 = vld [vmem:[%s3680_s2 + $0x8] sm:$0xff]  ;;  %v1433_v39 = vld [vmem:[%s3680_s2 + $0x18] sm:$0xff] }
  0x7b   : > { %vm694_vm6 = vcmp.eq.s32.totalorder %v3269_v17, 2  ;;  %v2439_v58 = vmin.u32 %v765_v16, %v3301_v45  ;;  %v846_v0 = vsel %vm836_vm0, %v843_v37, %v845_v2  ;;  %v847_v52 = vsel %vm835_vm14, %v825_v1, %v828_v54  ;;  %v1430_v17 = vld [vmem:[%s3680_s2] sm:$0xff] }
  0x7c   : > { %v849_v7 = vsel %vm837_vm9, %v831_v56, %v848_v46  ;;  %v3328_v22 = vmul.u32.u64.low %v851_v44, %v846_v0  ;;  %v3329_v10 = vmul.u32.u64.high %v851_v44, %v846_v0, %v3328_v22  ;;  %v1206_v11 = vand.u32 3, %v3200_v62  ;;  %v1435_v0 = vld [vmem:[%s3680_s2 + $0x28] sm:$0xff] }
  0x7d   : > { %v594_v9 = vsel %vm583_vm15, nan, %v593_v29  ;;  %v755_v20 = vadd.s32 %v3239_v51, %v3245_v57  ;;  %v767_v43 = vclz %v2439_v58  ;;  %v842_v8 = vsel %vm836_vm0, %v839_v63, %v841_v18  ;;  %v1434_v58 = vld [vmem:[%s3680_s2 + $0x20] sm:$0xff] }
  0x7e   : > { %v850_v28 = vsel %vm836_vm0, %v847_v52, %v849_v7  ;;  %vm1104_vm7 = vcmp.lt.s32.totalorder %v3272_v21, 2  ;;  %vm1105_vm3 = vcmp.eq.s32.totalorder %v3272_v21, 0  ;;  %vm1108_vm5 = vcmp.eq.s32.totalorder %v3272_v21, 2 }
  0x7f   : > { %v2440_v62 = vadd.s32 4294967294, %v767_v43  ;;  %v3344_v23 = vmul.u32.u64.low %v851_v44, %v850_v28  ;;  %v3345_v30 = vmul.u32.u64.high %v851_v44, %v850_v28, %v3344_v23  ;;  %v1107_v51 = vsel %vm1105_vm3, %v3247_v61, %v588_v55  ;;  %v1648_v28 = vld [vmem:[%s3682_s4] sm:$0xff] }
  0x80   : > { %v2799_v57 = vpop.eup %2798  ;;  %v858_v25 = vmul.u32 %v851_v44, %v842_v8  ;;  %v861_v26 = vadd.s32 1, %v3329_v10  ;;  %v1110_v14 = vsel %vm1108_vm5, %v591_v15, %v3252_v60  ;;  %vm1207_vm8 = vcmp.lt.s32.totalorder %v1206_v11, 2 }
  0x81   : > { %v2801_v38 = vpop.eup %2800  ;;  %v695_v12 = vxor.u32 2147483648, %v2799_v57  ;;  %vm2441_vm11 = vcmp.lt.s32.totalorder %v2440_v62, 0  ;;  %v1111_v32 = vsel %vm1104_vm7, %v1107_v51, %v1110_v14  ;;  %vm1208_vm12 = vcmp.eq.s32.totalorder %v1206_v11, 0  ;;  %v1649_v51 = vld [vmem:[%s3682_s4 + $0x8] sm:$0xff] }
  0x82   : > { %v692_v55 = vxor.u32 2147483648, %v2801_v38  ;;  %v770_v40 = vsel %vm2441_vm11, 0, %v2440_v62  ;;  %v1112_v50 = vsel %vm583_vm15, nan, %v1111_v32  ;;  %vm1478_vm13 = vcmask 719872  }
  0x83   : > { %v696_v61 = vsel %vm694_vm6, %v695_v12, %v2801_v38  ;;  %v771_v60 = vsub.s32 32, %v770_v40  ;;  %v775_v15 = vsub.s32 4294967266, %v770_v40  ;;  %vm1211_vm14 = vcmp.eq.s32.totalorder %v1206_v11, 2  ;;  %2589 = vmatprep.mubr.msk.f32.mxu0 %vm1478_vm13, %v1422_v36  ;;  %v1436_v11 = vld [vmem:[%s3680_s2 + $0x30] sm:$0xff] }
  0x84   : > { %v693_v41 = vsel %vm691_vm10, %v2799_v57, %v692_v55  ;;  %v772_v21 = vshll.u32 %v3301_v45, %v770_v40  ;;  %vm860_vm9 = vc.u32 %v3345_v30, %v3328_v22  ;;  %v3370_v4 = vpack.c.bf16 %v1112_v50, %v3229_v13  ;;  %v1432_v45 = vld [vmem:[%s3680_s2 + $0x10] sm:$0xff] }
  0x85   : > { %v697_v42 = vsel %vm690_vm2, %v693_v41, %v696_v61  ;;  %v773_v48 = vshrl.u32 %v755_v20, %v771_v60  ;;  %v776_v49 = vadd.s32 127, %v775_v15  ;;  %v862_v27 = vsel %vm860_vm9, %v861_v26, %v3329_v10  ;;  %v1652_v61 = vld [vmem:[%s3682_s4 + $0x20] sm:$0xff]  ;;  %v1653_v15 = vld [vmem:[%s3682_s4 + $0x28] sm:$0xff] }
  0x86   : > { %v698_v34 = vsel %vm687_vm4, nan, %v697_v42  ;;  %v863_v53 = vadd.s32 %v862_v27, %v858_v25  ;;  %v1210_v31 = vsel %vm1208_vm12, %v2799_v57, %v692_v55  ;;  %v1213_v33 = vsel %vm1211_vm14, %v695_v12, %v2801_v38  ;;  %v1651_v12 = vld [vmem:[%s3682_s4 + $0x18] sm:$0xff] }
  0x87   : > { %v2689_v1 = vpack.c.bf16 %v698_v34, %v594_v9  ;;  %v777_v54 = vshll.u32 %v776_v49, 23  ;;  %v3379_v56 = vsel %vm1207_vm8, %v1210_v31, %v1213_v33  ;;  %v774_v35 = vor.u32 %v773_v48, %v772_v21  ;;  %v1437_v9 = vld [vmem:[%s3680_s2 + $0x38] sm:$0xff]  ;;  %v1654_v49 = vld [vmem:[%s3682_s4 + $0x30] sm:$0xff]  ;;  %v1866_v33 = vld [vmem:[%s3684_s6] sm:$0xff] }
  0x88   : > { %v864_v13 = vadd.s32 536870912, %v863_v53  ;;  %v2888_v29 = vmov 0   ;;  %vm701_vm15 = vcmp.lt.s32.totalorder %v2985_v24, 0  ;;  %v859_v8 = vadd.s32 %v3328_v22, %v3345_v30 }
  0x89   : > { %2690 = vmatprep.subr.bf16.mxu0 %v2689_v1  ;;  %v778_v37 = vor.u32 4788187, %v777_v54  ;;  %2788 = vset.pattern.permute.xlu0 %v2888_v29  ;;  %v781_v18 = vcvt.s32.f32 %v774_v35  ;;  %vm3416_vm1 = vcmp.le.f32.partialorder %v699_v6, 0.7853982  ;;  %v1650_v6 = vld [vmem:[%s3682_s4 + $0x10] sm:$0xff]  ;;  %v785_v36 = vsub.s32 4, %v3286_v3 }
  0x8a   : > { %2692 = vmatpush3.bf16.msra.mxu0 %v2689_v1  ;;  %v3387_v44 = vshrl.u32 %v864_v13, 30  ;;  %1440 = vperm.xlu0 %2788, %v1430_v17   ;;  %vm805_vm10 = vcmp.lt.s32.totalorder %v3073_v19, 0  ;;  %vm804_vm2 = vcmp.le.f32.partialorder %v803_v59, 0.7853982  ;;  %v1867_v13 = vld [vmem:[%s3684_s6 + $0x8] sm:$0xff]  ;;  %vm791_vm11 = vweird.f32 %v2985_v24 }
  0x8b   : > { %2789 = vset.pattern.permute.xlu1 %v2888_v29  ;;  %v779_v63 = vand.u32 2147483647, %v778_v37  ;;  %v786_v60 = vsel %vm701_vm15, %v785_v36, %v3286_v3  ;;  %v1655_v3 = vld [vmem:[%s3682_s4 + $0x38] sm:$0xff]  ;;  %v1868_v37 = vld [vmem:[%s3684_s6 + $0x10] sm:$0xff] }
  0x8c   : > { %v866_v16 = vshll.u32 %v3387_v44, 30  ;;  %1450 = vperm.xlu1 %2789, %v1432_v45   ;;  %v889_v21 = vsub.s32 4, %v3387_v44  ;;  %v788_v42 = vsel %vm3416_vm1, 0, %v786_v60  ;;  %v2085_v36 = vld [vmem:[%s3686_s8 + $0x10] sm:$0xff] }
  0x8d   : > { %v782_v52 = vmul.f32 %v781_v18, %v779_v63  ;;  %v1870_v63 = vld [vmem:[%s3684_s6 + $0x20] sm:$0xff]  ;;  %v1871_v18 = vld [vmem:[%s3684_s6 + $0x28] sm:$0xff]  ;;  %v1424_v60 = vld [vmem:[%s3679_s1 + $0x10] sm:$0xff] }
  0x8e   : > { %v867_v2 = vsub.s32 %v863_v53, %v866_v16  ;;  %1445 = vperm.xlu0 %2788, %v1431_v47   ;;  %v890_v34 = vsel %vm805_vm10, %v889_v21, %v3387_v44  ;;  %v792_v53 = vadd.s32 3, %v788_v42  ;;  %v1869_v44 = vld [vmem:[%s3684_s6 + $0x18] sm:$0xff]  ;;  %v1309_v47 = vand.u32 3, %v788_v42  ;;  %v2294_v21 = vld [vmem:[%s3687_s9 + $0x10] sm:$0xff]  ;;  %v1426_v42 = vld [vmem:[%s3679_s1 + $0x20] sm:$0xff] }
  0x8f   : > { %v783_v20 = vxor.u32 2147483648, %v782_v52  ;;  %v892_v54 = vsel %vm804_vm2, 0, %v890_v34  ;;  %v2297_v34 = vld [vmem:[%s3687_s9 + $0x28] sm:$0xff] }
  0x90   : > { %v869_v46 = vsub.s32 0, %v867_v2  ;;  %1455 = vperm.xlu1 %2789, %v1433_v39   ;;  %v793_v45 = vand.u32 3, %v792_v53  ;;  %v896_v35 = vadd.s32 3, %v892_v54  ;;  %vm1311_vm5 = vcmp.eq.s32.totalorder %v1309_v47, 0  ;;  %v1429_v53 = vld [vmem:[%s3679_s1 + $0x38] sm:$0xff] }
  0x91   : > { %v784_v22 = vsel %vm701_vm15, %v783_v20, %v782_v52  ;;  %vm1314_vm8 = vcmp.eq.s32.totalorder %v1309_v47, 2  ;;  %vm1310_vm9 = vcmp.lt.s32.totalorder %v1309_v47, 2 }
  0x92   : > { %v2443_v7 = vmin.u32 %v869_v46, %v867_v2  ;;  %1460 = vperm.xlu0 %2788, %v1434_v58   ;;  %v787_v38 = vsel %vm3416_vm1, %v2985_v24, %v784_v22  ;;  %vm795_vm6 = vcmp.eq.s32.totalorder %v793_v45, 0  ;;  %vm798_vm7 = vcmp.eq.s32.totalorder %v793_v45, 2  ;;  %v2087_v24 = vld [vmem:[%s3686_s8 + $0x20] sm:$0xff] }
  0x93   : > { %2802 = vcosq.f32 %v787_v38  ;;  %v897_v39 = vand.u32 3, %v896_v35  ;;  %vm794_vm3 = vcmp.lt.s32.totalorder %v793_v45, 2 }
  0x94   : > { %v871_v10 = vclz %v2443_v7  ;;  %1465 = vperm.xlu1 %2789, %v1435_v0   ;;  %2804 = vsinq.f32 %v787_v38  ;;  %v1872_v0 = vld [vmem:[%s3684_s6 + $0x30] sm:$0xff]  ;;  %v2086_v38 = vld [vmem:[%s3686_s8 + $0x18] sm:$0xff] }
  0x95   : > { %vm902_vm12 = vcmp.eq.s32.totalorder %v897_v39, 2  ;;  %vm899_vm14 = vcmp.eq.s32.totalorder %v897_v39, 0  ;;  %vm898_vm15 = vcmp.lt.s32.totalorder %v897_v39, 2 }
  0x96   : > { %v2444_v43 = vadd.s32 4294967294, %v871_v10  ;;  %1470 = vperm.xlu0 %2788, %v1436_v11   ;;  %v1873_v11 = vld [vmem:[%s3684_s6 + $0x38] sm:$0xff] }
  0x98   : > { %vm2445_vm0 = vcmp.lt.s32.totalorder %v2444_v43, 0  ;;  %1475 = vperm.xlu1 %2789, %v1437_v9  }
  0x99   : > { %v874_v23 = vsel %vm2445_vm0, 0, %v2444_v43  ;;  %vm895_vm0 = vweird.f32 %v3073_v19 }
  0x9a   : > { %v875_v30 = vsub.s32 32, %v874_v23  ;;  %v876_v57 = vshll.u32 %v867_v2, %v874_v23  ;;  %v879_v25 = vsub.s32 4294967266, %v874_v23  ;;  %1658 = vperm.xlu0 %2788, %v1648_v28   ;;  %v1412_v28 = vand.u32 3, %v892_v54  ;;  %v1640_v54 = vld [vmem:[%s3681_s3] sm:$0xff] }
  0x9c   : > { %v877_v26 = vshrl.u32 %v859_v8, %v875_v30  ;;  %v880_v14 = vadd.s32 127, %v879_v25  ;;  %1663 = vperm.xlu1 %2789, %v1649_v51   ;;  %v2083_v51 = vld [vmem:[%s3686_s8] sm:$0xff]  ;;  %vm1414_vm1 = vcmp.eq.s32.totalorder %v1412_v28, 0 }
  0x9d   : > { %v2803_v17 = vpop.eup %2802 }
  0x9e   : > { %v878_v32 = vor.u32 %v877_v26, %v876_v57  ;;  %v881_v55 = vshll.u32 %v880_v14, 23  ;;  %1668 = vperm.xlu0 %2788, %v1650_v6   ;;  %v2805_v59 = vpop.eup %2804  ;;  %v799_v16 = vxor.u32 2147483648, %v2803_v17  ;;  %v2084_v57 = vld [vmem:[%s3686_s8 + $0x8] sm:$0xff]  ;;  %v1215_v14 = vsel %vm687_vm4, nan, %v3379_v56 }
  0x9f   : > { %v796_v29 = vxor.u32 2147483648, %v2805_v59  ;;  %vm1696_vm4 = vcmask 523264  }
  0xa0   : > { %v882_v40 = vor.u32 4788187, %v881_v55  ;;  %v885_v50 = vcvt.s32.f32 %v878_v32  ;;  %1673 = vperm.xlu1 %2789, %v1651_v12   ;;  %v800_v46 = vsel %vm798_vm7, %v799_v16, %v2805_v59  ;;  %v1316_v43 = vsel %vm1314_vm8, %v799_v16, %v2805_v59  ;;  %v2088_v55 = vld [vmem:[%s3686_s8 + $0x28] sm:$0xff]  ;;  %2617 = vmatprep.mubr.msk.f32.mxu1 %vm1696_vm4, %v1640_v54  ;;  %v1644_v54 = vld [vmem:[%s3681_s3 + $0x20] sm:$0xff] }
  0xa1   : > { %v797_v2 = vsel %vm795_vm6, %v2803_v17, %v796_v29  ;;  %v1313_v20 = vsel %vm1311_vm5, %v2803_v17, %v796_v29 }
  0xa2   : > { %v883_v41 = vand.u32 2147483647, %v882_v40  ;;  %1678 = vperm.xlu0 %2788, %v1652_v61   ;;  %v801_v7 = vsel %vm794_vm3, %v797_v2, %v800_v46  ;;  %v1317_v30 = vsel %vm1310_vm9, %v1313_v20, %v1316_v43  ;;  %v2090_v61 = vld [vmem:[%s3686_s8 + $0x38] sm:$0xff] }
  0xa3   : > { %v802_v62 = vsel %vm791_vm11, nan, %v801_v7  ;;  %v1318_v6 = vsel %vm791_vm11, nan, %v1317_v30 }
  0xa4   : > { %v886_v48 = vmul.f32 %v885_v50, %v883_v41  ;;  %1683 = vperm.xlu1 %2789, %v1653_v15   ;;  %v2701_v5 = vpack.c.bf16 %v1318_v6, %v1215_v14  ;;  %v2089_v50 = vld [vmem:[%s3686_s8 + $0x30] sm:$0xff]  ;;  %v2293_v15 = vld [vmem:[%s3687_s9 + $0x8] sm:$0xff]  ;;  %v1425_v41 = vld [vmem:[%s3679_s1 + $0x18] sm:$0xff] }
  0xa6   : > { %v887_v27 = vxor.u32 2147483648, %v886_v48  ;;  %1688 = vperm.xlu0 %2788, %v1654_v49   ;;  %v1427_v49 = vld [vmem:[%s3679_s1 + $0x28] sm:$0xff] }
  0xa8   : > { %v888_v31 = vsel %vm805_vm10, %v887_v27, %v886_v48  ;;  %1693 = vperm.xlu1 %2789, %v1655_v3   ;;  %vm1417_vm10 = vcmp.eq.s32.totalorder %v1412_v28, 2  ;;  %v2295_v48 = vld [vmem:[%s3687_s9 + $0x18] sm:$0xff]  ;;  %v2296_v3 = vld [vmem:[%s3687_s9 + $0x20] sm:$0xff]  ;;  %v1428_v27 = vld [vmem:[%s3679_s1 + $0x30] sm:$0xff] }
  0xa9   : > { %v891_v1 = vsel %vm804_vm2, %v3073_v19, %v888_v31  ;;  %vm1413_vm2 = vcmp.lt.s32.totalorder %v1412_v28, 2  ;;  %v2292_v19 = vld [vmem:[%s3687_s9] sm:$0xff]  ;;  %v2298_v31 = vld [vmem:[%s3687_s9 + $0x30] sm:$0xff] }
  0xaa   : > { %2806 = vcosq.f32 %v891_v1  ;;  %1876 = vperm.xlu0 %2788, %v1866_v33   ;;  %v2299_v33 = vld [vmem:[%s3687_s9 + $0x38] sm:$0xff] }
  0xab   : > { %2808 = vsinq.f32 %v891_v1  ;;  %v2361_v1 = vld [vmem:[#allocation2] sm:$0x1] }
  0xac   : > { %1881 = vperm.xlu1 %2789, %v1867_v13  }
  0xae   : > { %1886 = vperm.xlu0 %2788, %v1868_v37  }
  0xb0   : > { %1891 = vperm.xlu1 %2789, %v1869_v44  }
  0xb2   : > { %1896 = vperm.xlu0 %2788, %v1870_v63  }
  0xb4   : > { %v2807_v58 = vpop.eup %2806  ;;  %1901 = vperm.xlu1 %2789, %v1871_v18  }
  0xb5   : > { %v2809_v52 = vpop.eup %2808  ;;  %v903_v10 = vxor.u32 2147483648, %v2807_v58 }
  0xb6   : > { %v900_v9 = vxor.u32 2147483648, %v2809_v52  ;;  %1906 = vperm.xlu0 %2788, %v1872_v0  }
  0xb7   : > { %v904_v8 = vsel %vm902_vm12, %v903_v10, %v2809_v52  ;;  %v1419_v32 = vsel %vm1417_vm10, %v903_v10, %v2809_v52 }
  0xb8   : > { %v901_v23 = vsel %vm899_vm14, %v2807_v58, %v900_v9  ;;  %1911 = vperm.xlu1 %2789, %v1873_v11   ;;  %v1416_v12 = vsel %vm1414_vm1, %v2807_v58, %v900_v9 }
  0xb9   : > { %v905_v22 = vsel %vm898_vm15, %v901_v23, %v904_v8  ;;  %v1420_v56 = vsel %vm1413_vm2, %v1416_v12, %v1419_v32 }
  0xba   : > { %v906_v25 = vsel %vm895_vm0, nan, %v905_v22  ;;  %2093 = vperm.xlu0 %2788, %v2083_v51   ;;  %v1421_v40 = vsel %vm895_vm0, nan, %v1420_v56 }
  0xbb   : > { %v2693_v26 = vpack.c.bf16 %v906_v25, %v802_v62 }
  0xbc   : > { %2098 = vperm.xlu1 %2789, %v2084_v57  }
  0xbd   : > { %2694 = vmatprep.subr.bf16.mxu0 %v2693_v26 }
  0xbe   : > { %2696 = vmatpush3.bf16.msra.mxu0 %v2693_v26  ;;  %2103 = vperm.xlu0 %2788, %v2085_v36  }
  0xbf   : > { %2698 = vmatprep.subr.bf16.mxu0 %v3370_v4 }
  0xc0   : > { %2108 = vperm.xlu1 %2789, %v2086_v38  }
  0xc2   : > { %2700 = vmatpush3.bf16.msra.mxu0 %v3370_v4  ;;  %2113 = vperm.xlu0 %2788, %v2087_v24   ;;  %v1423_v4 = vld [vmem:[%s3679_s1 + $0x8] sm:$0xff] }
  0xc3   : > { %2702 = vmatprep.subr.bf16.mxu0 %v2701_v5 }
  0xc4   : > { %2118 = vperm.xlu1 %2789, %v2088_v55  }
  0xc6   : > { %2704 = vmatpush3.bf16.msra.mxu0 %v2701_v5  ;;  %2123 = vperm.xlu0 %2788, %v2089_v50  }
  0xc7   : > { %2587 = vmatprep.subr.mxu0 %v1421_v40 }
  0xc8   : > { %2128 = vperm.xlu1 %2789, %v2090_v61  }
  0xca   : > { %2588 = vmatpush3.msra.mxu0 %v1421_v40  ;;  %2302 = vperm.xlu0 %2788, %v2292_v19  }
  0xcb   : > { %2590 = vmatmul.mubr.msk.f32.vlgmr.msra.gmra.mrb[0].mxu0 %vm1478_vm13, %v1423_v4 }
  0xcc   : > { %2592 = vmatprep.mubr.msk.f32.mxu0 %vm1478_vm13, %v1424_v60  ;;  %2307 = vperm.xlu1 %2789, %v2293_v15  }
  0xce   : > { %2312 = vperm.xlu0 %2788, %v2294_v21  }
  0xcf   : > { %2593 = vmatmul.mubr.msk.f32.gmra.mrb[2].mxu0 %vm1478_vm13, %v1425_v41 }
  0xd0   : > { %2595 = vmatprep.mubr.msk.f32.mxu0 %vm1478_vm13, %v1426_v42  ;;  %2317 = vperm.xlu1 %2789, %v2295_v48  }
  0xd2   : > { %2322 = vperm.xlu0 %2788, %v2296_v3  }
  0xd3   : > { %2596 = vmatmul.mubr.msk.f32.gmra.mrb[4].mxu0 %vm1478_vm13, %v1427_v49 }
  0xd4   : > { %2598 = vmatprep.mubr.msk.f32.mxu0 %vm1478_vm13, %v1428_v27  ;;  %2327 = vperm.xlu1 %2789, %v2297_v34  }
  0xd6   : > { %2332 = vperm.xlu0 %2788, %v2298_v31   ;;  %v1641_v31 = vld [vmem:[%s3681_s3 + $0x8] sm:$0xff] }
  0xd7   : > { %2599 = vmatmul.mubr.msk.f32.gmra.mrb[6].mxu0 %vm1478_vm13, %v1429_v53 }
  0xd8   : > { %2337 = vperm.xlu1 %2789, %v2299_v33   ;;  %v1642_v33 = vld [vmem:[%s3681_s3 + $0x10] sm:$0xff] }
  0xda   : > { %2364 = vperm.xlu0 %2788, %v2361_v1   ;;  %v1643_v1 = vld [vmem:[%s3681_s3 + $0x18] sm:$0xff] }
 0x109   : > { %v1441_v13 = vpop.permute.xlu0 %1440 }
 0x10b   : > { %v1451_v17 = vpop.permute.xlu1 %1450 }
 0x10d   : > { %v1446_v59 = vpop.permute.xlu0 %1445 }
 0x10f   : > { %v1456_v45 = vpop.permute.xlu1 %1455 }
 0x111   : > { %v1461_v58 = vpop.permute.xlu0 %1460 }
 0x113   : > { %v1466_v2 = vpop.permute.xlu1 %1465 }
 0x115   : > { %v1471_v62 = vpop.permute.xlu0 %1470 }
 0x117   : > { %v1476_v43 = vpop.permute.xlu1 %1475 }
 0x19e   : > { %v2591_v35 = vpop.f32.mrb[0].mxu0 }
 0x19f   : > { %v1575_v37 = vadd.f32 %v2591_v35, %v1446_v59  ;;  %v1569_v44 = vpop.f32.mrb[1].mxu0  ;;  %v1647_v59 = vld [vmem:[%s3681_s3 + $0x38] sm:$0xff]  ;;  %v1664_v35 = vpop.permute.xlu1 %1663 }
 0x1a0   : > { %v1570_v29 = vadd.f32 %v1569_v44, %v1441_v13  ;;  %v1645_v13 = vld [vmem:[%s3681_s3 + $0x28] sm:$0xff] }
 0x1a1   : > { %v1609_v16 = vmul.f32 0.5, %v1575_v37  ;;  %v1659_v37 = vpop.permute.xlu0 %1658 }
 0x1a2   : > { %v1608_v47 = vmul.f32 0.5, %v1570_v29  ;;  %v2594_v39 = vpop.f32.mrb[2].mxu0 }
 0x1a3   : > { %2810 = vtanh.f32 %v1609_v16  ;;  %v1585_v63 = vadd.f32 %v2594_v39, %v1456_v45  ;;  %v1579_v18 = vpop.f32.mrb[3].mxu0  ;;  %v1858_v45 = vld [vmem:[%s3683_s5] sm:$0xff]  ;;  %v1674_v44 = vpop.permute.xlu1 %1673 }
 0x1a4   : > { %2812 = vtanh.f32 %v1608_v47  ;;  %v1580_v46 = vadd.f32 %v1579_v18, %v1451_v17  ;;  %v1646_v17 = vld [vmem:[%s3681_s3 + $0x30] sm:$0xff] }
 0x1a5   : > { %v1611_v0 = vmul.f32 0.5, %v1585_v63 }
 0x1a6   : > { %v1610_v52 = vmul.f32 0.5, %v1580_v46  ;;  %v2597_v7 = vpop.f32.mrb[4].mxu0 }
 0x1a7   : > { %2814 = vtanh.f32 %v1611_v0  ;;  %v1595_v10 = vadd.f32 %v2597_v7, %v1466_v2  ;;  %v1589_v11 = vpop.f32.mrb[5].mxu0 }
 0x1a8   : > { %2816 = vtanh.f32 %v1610_v52  ;;  %v1590_v9 = vadd.f32 %v1589_v11, %v1461_v58 }
 0x1a9   : > { %v1613_v20 = vmul.f32 0.5, %v1595_v10 }
 0x1aa   : > { %v1612_v8 = vmul.f32 0.5, %v1590_v9  ;;  %v2600_v28 = vpop.f32.mrb[6].mxu0 }
 0x1ab   : > { %2818 = vtanh.f32 %v1613_v20  ;;  %v1605_v23 = vadd.f32 %v2600_v28, %v1476_v43  ;;  %v1599_v51 = vpop.f32.mrb[7].mxu0 }
 0x1ac   : > { %2820 = vtanh.f32 %v1612_v8  ;;  %v1600_v22 = vadd.f32 %v1599_v51, %v1471_v62 }
 0x1ad   : > { %v2811_v30 = vpop.eup %2810  ;;  %v1615_v57 = vmul.f32 0.5, %v1605_v23 }
 0x1ae   : > { %v2813_v25 = vpop.eup %2812  ;;  %v1625_v26 = vadd.f32 1.0, %v2811_v30  ;;  %v1614_v14 = vmul.f32 0.5, %v1600_v22 }
 0x1af   : > { %v1624_v6 = vadd.f32 1.0, %v2813_v25  ;;  %2822 = vtanh.f32 %v1615_v57 }
 0x1b0   : > { %v1633_v36 = vmul.f32 %v1625_v26, %v1609_v16  ;;  %2824 = vtanh.f32 %v1614_v14  ;;  %v1669_v16 = vpop.permute.xlu0 %1668 }
 0x1b1   : > { %v2815_v38 = vpop.eup %2814  ;;  %v1632_v12 = vmul.f32 %v1624_v6, %v1608_v47 }
 0x1b2   : > { %v2817_v32 = vpop.eup %2816  ;;  %v1627_v5 = vadd.f32 1.0, %v2815_v38 }
 0x1b3   : > { %v1626_v24 = vadd.f32 1.0, %v2817_v32  ;;  %v2705_v56 = vpack.c.bf16 %v1633_v36, %v1632_v12 }
 0x1b4   : > { %v1635_v55 = vmul.f32 %v1627_v5, %v1611_v0  ;;  %v1679_v10 = vpop.permute.xlu0 %1678 }
 0x1b5   : > { %v2819_v40 = vpop.eup %2818  ;;  %v1634_v50 = vmul.f32 %v1626_v24, %v1610_v52  ;;  %2706 = vmatprep.subr.bf16.mxu1 %v2705_v56  ;;  %v1684_v52 = vpop.permute.xlu1 %1683 }
 0x1b6   : > { %v2821_v61 = vpop.eup %2820  ;;  %v1629_v4 = vadd.f32 1.0, %v2819_v40  ;;  %2708 = vmatpush3.bf16.msra.mxu1 %v2705_v56 }
 0x1b7   : > { %v1628_v19 = vadd.f32 1.0, %v2821_v61  ;;  %v2709_v60 = vpack.c.bf16 %v1635_v55, %v1634_v50 }
 0x1b8   : > { %v1637_v15 = vmul.f32 %v1629_v4, %v1613_v20  ;;  %v1689_v30 = vpop.permute.xlu0 %1688 }
 0x1b9   : > { %v2823_v41 = vpop.eup %2822  ;;  %v1636_v21 = vmul.f32 %v1628_v19, %v1612_v8  ;;  %2710 = vmatprep.subr.bf16.mxu1 %v2709_v60  ;;  %v1694_v23 = vpop.permute.xlu1 %1693 }
 0x1ba   : > { %v2825_v42 = vpop.eup %2824  ;;  %v1631_v48 = vadd.f32 1.0, %v2823_v41  ;;  %2712 = vmatpush3.bf16.msra.mxu1 %v2709_v60 }
 0x1bb   : > { %v1630_v49 = vadd.f32 1.0, %v2825_v42  ;;  %v2713_v3 = vpack.c.bf16 %v1637_v15, %v1636_v21 }
 0x1bc   : > { %v1639_v27 = vmul.f32 %v1631_v48, %v1615_v57 }
 0x1bd   : > { %v1638_v34 = vmul.f32 %v1630_v49, %v1614_v14  ;;  %2714 = vmatprep.subr.bf16.mxu1 %v2713_v3 }
 0x1be   : > { %2716 = vmatpush3.bf16.msra.mxu1 %v2713_v3 }
 0x1bf   : > { %v2717_v53 = vpack.c.bf16 %v1639_v27, %v1638_v34 }
 0x1c1   : > { %2718 = vmatprep.subr.bf16.mxu1 %v2717_v53 }
 0x1c2   : > { %2720 = vmatpush3.bf16.msra.mxu1 %v2717_v53 }
 0x1c5   : > { %2618 = vmatmul.mubr.msk.f32.vlgmr.msra.gmra.mrb[0].mxu1 %vm1696_vm4, %v1641_v31 }
 0x1c6   : > { %2620 = vmatprep.mubr.msk.f32.mxu1 %vm1696_vm4, %v1642_v33 }
 0x1c9   : > { %2621 = vmatmul.mubr.msk.f32.gmra.mrb[2].mxu1 %vm1696_vm4, %v1643_v1 }
 0x1ca   : > { %2623 = vmatprep.mubr.msk.f32.mxu1 %vm1696_vm4, %v1644_v54 }
 0x1cd   : > { %2624 = vmatmul.mubr.msk.f32.gmra.mrb[4].mxu1 %vm1696_vm4, %v1645_v13  ;;  %v1859_v13 = vld [vmem:[%s3683_s5 + $0x8] sm:$0xff] }
 0x1ce   : > { %2626 = vmatprep.mubr.msk.f32.mxu1 %vm1696_vm4, %v1646_v17  ;;  %v1860_v17 = vld [vmem:[%s3683_s5 + $0x10] sm:$0xff] }
 0x1d1   : > { %2627 = vmatmul.mubr.msk.f32.gmra.mrb[6].mxu1 %vm1696_vm4, %v1647_v59  ;;  %v1861_v59 = vld [vmem:[%s3683_s5 + $0x18] sm:$0xff] }
 0x1d2   : > { %2645 = vmatprep.mubr.msk.f32.mxu1 %vm1696_vm4, %v1858_v45  ;;  %v1862_v45 = vld [vmem:[%s3683_s5 + $0x20] sm:$0xff] }
 0x298   : > { %v2619_v29 = vpop.f32.mrb[0].mxu1 }
 0x299   : > { %v1793_v47 = vadd.f32 %v2619_v29, %v1664_v35  ;;  %v1787_v39 = vpop.f32.mrb[1].mxu1  ;;  %v1863_v35 = vld [vmem:[%s3683_s5 + $0x28] sm:$0xff]  ;;  %v2075_v29 = vld [vmem:[%s3685_s7] sm:$0xff] }
 0x29a   : > { %v1788_v63 = vadd.f32 %v1787_v39, %v1659_v37  ;;  %v1864_v37 = vld [vmem:[%s3683_s5 + $0x30] sm:$0xff]  ;;  %2673 = vmatprep.mubr.msk.f32.mxu0 %vm1696_vm4, %v2075_v29  ;;  %v2079_v29 = vld [vmem:[%s3685_s7 + $0x20] sm:$0xff] }
 0x29b   : > { %v1827_v18 = vmul.f32 0.5, %v1793_v47  ;;  %v1877_v47 = vpop.permute.xlu0 %1876 }
 0x29c   : > { %v1826_v2 = vmul.f32 0.5, %v1788_v63  ;;  %v2622_v46 = vpop.f32.mrb[2].mxu1 }
 0x29d   : > { %2826 = vtanh.f32 %v1827_v18  ;;  %v1803_v58 = vadd.f32 %v2622_v46, %v1674_v44  ;;  %v1797_v0 = vpop.f32.mrb[3].mxu1  ;;  %v1865_v44 = vld [vmem:[%s3683_s5 + $0x38] sm:$0xff] }
 0x29e   : > { %2828 = vtanh.f32 %v1826_v2  ;;  %v1798_v7 = vadd.f32 %v1797_v0, %v1669_v16  ;;  %v1882_v16 = vpop.permute.xlu1 %1881 }
 0x29f   : > { %v1829_v11 = vmul.f32 0.5, %v1803_v58 }
 0x2a0   : > { %v1828_v9 = vmul.f32 0.5, %v1798_v7  ;;  %v2625_v20 = vpop.f32.mrb[4].mxu1 }
 0x2a1   : > { %2830 = vtanh.f32 %v1829_v11  ;;  %v1813_v43 = vadd.f32 %v2625_v20, %v1684_v52  ;;  %v1807_v8 = vpop.f32.mrb[5].mxu1 }
 0x2a2   : > { %2832 = vtanh.f32 %v1828_v9  ;;  %v1808_v28 = vadd.f32 %v1807_v8, %v1679_v10  ;;  %v1892_v39 = vpop.permute.xlu1 %1891 }
 0x2a3   : > { %v1831_v62 = vmul.f32 0.5, %v1813_v43 }
 0x2a4   : > { %v1830_v51 = vmul.f32 0.5, %v1808_v28  ;;  %v2628_v22 = vpop.f32.mrb[6].mxu1 }
 0x2a5   : > { %2834 = vtanh.f32 %v1831_v62  ;;  %v1823_v57 = vadd.f32 %v2628_v22, %v1694_v23  ;;  %v1817_v25 = vpop.f32.mrb[7].mxu1 }
 0x2a6   : > { %2836 = vtanh.f32 %v1830_v51  ;;  %v1818_v26 = vadd.f32 %v1817_v25, %v1689_v30 }
 0x2a7   : > { %v2827_v14 = vpop.eup %2826  ;;  %v1833_v6 = vmul.f32 0.5, %v1823_v57 }
 0x2a8   : > { %v2829_v36 = vpop.eup %2828  ;;  %v1843_v38 = vadd.f32 1.0, %v2827_v14  ;;  %v1832_v12 = vmul.f32 0.5, %v1818_v26 }
 0x2a9   : > { %v1842_v32 = vadd.f32 1.0, %v2829_v36  ;;  %2838 = vtanh.f32 %v1833_v6 }
 0x2aa   : > { %v1851_v5 = vmul.f32 %v1843_v38, %v1827_v18  ;;  %2840 = vtanh.f32 %v1832_v12  ;;  %v1887_v18 = vpop.permute.xlu0 %1886 }
 0x2ab   : > { %v2831_v24 = vpop.eup %2830  ;;  %v1850_v56 = vmul.f32 %v1842_v32, %v1826_v2 }
 0x2ac   : > { %v2833_v55 = vpop.eup %2832  ;;  %v1845_v40 = vadd.f32 1.0, %v2831_v24 }
 0x2ad   : > { %v1844_v50 = vadd.f32 1.0, %v2833_v55  ;;  %v2721_v61 = vpack.c.bf16 %v1851_v5, %v1850_v56 }
 0x2ae   : > { %v1853_v4 = vmul.f32 %v1845_v40, %v1829_v11  ;;  %v1897_v43 = vpop.permute.xlu0 %1896 }
 0x2af   : > { %v2835_v19 = vpop.eup %2834  ;;  %v1852_v60 = vmul.f32 %v1844_v50, %v1828_v9  ;;  %2722 = vmatprep.subr.bf16.mxu1 %v2721_v61  ;;  %v1902_v9 = vpop.permute.xlu1 %1901 }
 0x2b0   : > { %v2837_v15 = vpop.eup %2836  ;;  %v1847_v41 = vadd.f32 1.0, %v2835_v19  ;;  %2724 = vmatpush3.bf16.msra.mxu1 %v2721_v61 }
 0x2b1   : > { %v1846_v21 = vadd.f32 1.0, %v2837_v15  ;;  %v2725_v42 = vpack.c.bf16 %v1853_v4, %v1852_v60 }
 0x2b2   : > { %v1855_v48 = vmul.f32 %v1847_v41, %v1831_v62  ;;  %v1907_v14 = vpop.permute.xlu0 %1906 }
 0x2b3   : > { %v2839_v49 = vpop.eup %2838  ;;  %v1854_v3 = vmul.f32 %v1846_v21, %v1830_v51  ;;  %2726 = vmatprep.subr.bf16.mxu1 %v2725_v42  ;;  %v1912_v57 = vpop.permute.xlu1 %1911 }
 0x2b4   : > { %v2841_v27 = vpop.eup %2840  ;;  %v1849_v34 = vadd.f32 1.0, %v2839_v49  ;;  %2728 = vmatpush3.bf16.msra.mxu1 %v2725_v42 }
 0x2b5   : > { %v1848_v53 = vadd.f32 1.0, %v2841_v27  ;;  %v2729_v31 = vpack.c.bf16 %v1855_v48, %v1854_v3 }
 0x2b6   : > { %v1857_v33 = vmul.f32 %v1849_v34, %v1833_v6 }
 0x2b7   : > { %v1856_v1 = vmul.f32 %v1848_v53, %v1832_v12  ;;  %2730 = vmatprep.subr.bf16.mxu1 %v2729_v31 }
 0x2b8   : > { %2732 = vmatpush3.bf16.msra.mxu1 %v2729_v31 }
 0x2b9   : > { %v2733_v54 = vpack.c.bf16 %v1857_v33, %v1856_v1 }
 0x2bb   : > { %2734 = vmatprep.subr.bf16.mxu1 %v2733_v54 }
 0x2bc   : > { %2736 = vmatpush3.bf16.msra.mxu1 %v2733_v54 }
 0x2bf   : > { %2646 = vmatmul.mubr.msk.f32.vlgmr.msra.gmra.mrb[8].mxu1 %vm1696_vm4, %v1859_v13 }
 0x2c0   : > { %2648 = vmatprep.mubr.msk.f32.mxu1 %vm1696_vm4, %v1860_v17 }
 0x2c3   : > { %2649 = vmatmul.mubr.msk.f32.gmra.mrb[10].mxu1 %vm1696_vm4, %v1861_v59 }
 0x2c4   : > { %2651 = vmatprep.mubr.msk.f32.mxu1 %vm1696_vm4, %v1862_v45 }
 0x2c7   : > { %2652 = vmatmul.mubr.msk.f32.gmra.mrb[12].mxu1 %vm1696_vm4, %v1863_v35  ;;  %v2076_v35 = vld [vmem:[%s3685_s7 + $0x8] sm:$0xff] }
 0x2c8   : > { %2654 = vmatprep.mubr.msk.f32.mxu1 %vm1696_vm4, %v1864_v37  ;;  %v2077_v37 = vld [vmem:[%s3685_s7 + $0x10] sm:$0xff] }
 0x2cb   : > { %2655 = vmatmul.mubr.msk.f32.gmra.mrb[14].mxu1 %vm1696_vm4, %v1865_v44  ;;  %v2078_v44 = vld [vmem:[%s3685_s7 + $0x18] sm:$0xff] }
 0x392   : > { %v2647_v63 = vpop.f32.mrb[8].mxu1 }
 0x393   : > { %v2010_v2 = vadd.f32 %v2647_v63, %v1882_v16  ;;  %v2004_v46 = vpop.f32.mrb[9].mxu1  ;;  %v2080_v16 = vld [vmem:[%s3685_s7 + $0x28] sm:$0xff]  ;;  %v2094_v63 = vpop.permute.xlu0 %2093 }
 0x394   : > { %v2005_v58 = vadd.f32 %v2004_v46, %v1877_v47  ;;  %v2081_v47 = vld [vmem:[%s3685_s7 + $0x30] sm:$0xff] }
 0x395   : > { %v2044_v0 = vmul.f32 0.5, %v2010_v2 }
 0x396   : > { %v2043_v52 = vmul.f32 0.5, %v2005_v58  ;;  %v2650_v7 = vpop.f32.mrb[10].mxu1 }
 0x397   : > { %2842 = vtanh.f32 %v2044_v0  ;;  %v2020_v10 = vadd.f32 %v2650_v7, %v1892_v39  ;;  %v2014_v11 = vpop.f32.mrb[11].mxu1  ;;  %v2082_v39 = vld [vmem:[%s3685_s7 + $0x38] sm:$0xff]  ;;  %v2104_v2 = vpop.permute.xlu0 %2103 }
 0x398   : > { %2844 = vtanh.f32 %v2043_v52  ;;  %v2015_v20 = vadd.f32 %v2014_v11, %v1887_v18  ;;  %v2099_v18 = vpop.permute.xlu1 %2098 }
 0x399   : > { %v2046_v8 = vmul.f32 0.5, %v2020_v10 }
 0x39a   : > { %v2045_v28 = vmul.f32 0.5, %v2015_v20  ;;  %v2653_v62 = vpop.f32.mrb[12].mxu1 }
 0x39b   : > { %2846 = vtanh.f32 %v2046_v8  ;;  %v2030_v23 = vadd.f32 %v2653_v62, %v1902_v9  ;;  %v2024_v51 = vpop.f32.mrb[13].mxu1  ;;  %v2114_v7 = vpop.permute.xlu0 %2113 }
 0x39c   : > { %2848 = vtanh.f32 %v2045_v28  ;;  %v2025_v22 = vadd.f32 %v2024_v51, %v1897_v43  ;;  %v2109_v46 = vpop.permute.xlu1 %2108 }
 0x39d   : > { %v2048_v30 = vmul.f32 0.5, %v2030_v23 }
 0x39e   : > { %v2047_v25 = vmul.f32 0.5, %v2025_v22  ;;  %v2656_v26 = vpop.f32.mrb[14].mxu1 }
 0x39f   : > { %2850 = vtanh.f32 %v2048_v30  ;;  %v2040_v6 = vadd.f32 %v2656_v26, %v1912_v57  ;;  %v2034_v36 = vpop.f32.mrb[15].mxu1  ;;  %v2124_v51 = vpop.permute.xlu0 %2123 }
 0x3a0   : > { %2852 = vtanh.f32 %v2047_v25  ;;  %v2035_v38 = vadd.f32 %v2034_v36, %v1907_v14  ;;  %v2119_v9 = vpop.permute.xlu1 %2118 }
 0x3a1   : > { %v2843_v12 = vpop.eup %2842  ;;  %v2050_v32 = vmul.f32 0.5, %v2040_v6 }
 0x3a2   : > { %v2845_v5 = vpop.eup %2844  ;;  %v2060_v24 = vadd.f32 1.0, %v2843_v12  ;;  %v2049_v56 = vmul.f32 0.5, %v2035_v38 }
 0x3a3   : > { %v2059_v55 = vadd.f32 1.0, %v2845_v5  ;;  %2854 = vtanh.f32 %v2050_v32  ;;  %v2303_v5 = vpop.permute.xlu0 %2302 }
 0x3a4   : > { %v2068_v40 = vmul.f32 %v2060_v24, %v2044_v0  ;;  %2856 = vtanh.f32 %v2049_v56  ;;  %v2129_v26 = vpop.permute.xlu1 %2128 }
 0x3a5   : > { %v2847_v50 = vpop.eup %2846  ;;  %v2067_v61 = vmul.f32 %v2059_v55, %v2043_v52 }
 0x3a6   : > { %v2849_v4 = vpop.eup %2848  ;;  %v2062_v19 = vadd.f32 1.0, %v2847_v50 }
 0x3a7   : > { %v2061_v60 = vadd.f32 1.0, %v2849_v4  ;;  %v2737_v15 = vpack.c.bf16 %v2068_v40, %v2067_v61 }
 0x3a8   : > { %v2070_v41 = vmul.f32 %v2062_v19, %v2046_v8  ;;  %v2308_v50 = vpop.permute.xlu1 %2307 }
 0x3a9   : > { %v2851_v21 = vpop.eup %2850  ;;  %v2069_v42 = vmul.f32 %v2061_v60, %v2045_v28  ;;  %2738 = vmatprep.subr.bf16.mxu0 %v2737_v15 }
 0x3aa   : > { %v2853_v48 = vpop.eup %2852  ;;  %v2064_v49 = vadd.f32 1.0, %v2851_v21  ;;  %2740 = vmatpush3.bf16.msra.mxu0 %v2737_v15 }
 0x3ab   : > { %v2063_v3 = vadd.f32 1.0, %v2853_v48  ;;  %v2741_v27 = vpack.c.bf16 %v2070_v41, %v2069_v42  ;;  %v2313_v42 = vpop.permute.xlu0 %2312 }
 0x3ac   : > { %v2072_v34 = vmul.f32 %v2064_v49, %v2048_v30 }
 0x3ad   : > { %v2855_v53 = vpop.eup %2854  ;;  %v2071_v31 = vmul.f32 %v2063_v3, %v2047_v25  ;;  %2742 = vmatprep.subr.bf16.mxu0 %v2741_v27 }
 0x3ae   : > { %v2857_v33 = vpop.eup %2856  ;;  %v2066_v1 = vadd.f32 1.0, %v2855_v53  ;;  %2744 = vmatpush3.bf16.msra.mxu0 %v2741_v27 }
 0x3af   : > { %v2065_v54 = vadd.f32 1.0, %v2857_v33  ;;  %v2745_v13 = vpack.c.bf16 %v2072_v34, %v2071_v31  ;;  %v2318_v34 = vpop.permute.xlu1 %2317 }
 0x3b0   : > { %v2074_v17 = vmul.f32 %v2066_v1, %v2050_v32 }
 0x3b1   : > { %v2073_v59 = vmul.f32 %v2065_v54, %v2049_v56  ;;  %2746 = vmatprep.subr.bf16.mxu0 %v2745_v13 }
 0x3b2   : > { %2748 = vmatpush3.bf16.msra.mxu0 %v2745_v13 }
 0x3b3   : > { %v2749_v45 = vpack.c.bf16 %v2074_v17, %v2073_v59 }
 0x3b5   : > { %2750 = vmatprep.subr.bf16.mxu0 %v2749_v45 }
 0x3b6   : > { %2752 = vmatpush3.bf16.msra.mxu0 %v2749_v45  ;;  %v2323_v45 = vpop.permute.xlu0 %2322 }
 0x3b9   : > { %2674 = vmatmul.mubr.msk.f32.vlgmr.msra.gmra.mrb[8].mxu0 %vm1696_vm4, %v2076_v35 }
 0x3ba   : > { %2676 = vmatprep.mubr.msk.f32.mxu0 %vm1696_vm4, %v2077_v37 }
 0x3bd   : > { %2677 = vmatmul.mubr.msk.f32.gmra.mrb[10].mxu0 %vm1696_vm4, %v2078_v44 }
 0x3be   : > { %2679 = vmatprep.mubr.msk.f32.mxu0 %vm1696_vm4, %v2079_v29 }
 0x3c1   : > { %2680 = vmatmul.mubr.msk.f32.gmra.mrb[12].mxu0 %vm1696_vm4, %v2080_v16 }
 0x3c2   : > { %2682 = vmatprep.mubr.msk.f32.mxu0 %vm1696_vm4, %v2081_v47 }
 0x3c5   : > { %2683 = vmatmul.mubr.msk.f32.gmra.mrb[14].mxu0 %vm1696_vm4, %v2082_v39  ;;  %v2328_v39 = vpop.permute.xlu1 %2327 }
 0x48c   : > { %v2675_v58 = vpop.f32.mrb[8].mxu0 }
 0x48d   : > { %v2227_v0 = vadd.f32 %v2675_v58, %v2099_v18  ;;  %v2221_v52 = vpop.f32.mrb[9].mxu0 }
 0x48e   : > { %v2222_v10 = vadd.f32 %v2221_v52, %v2094_v63 }
 0x48f   : > { %v2261_v11 = vmul.f32 0.5, %v2227_v0 }
 0x490   : > { %v2260_v20 = vmul.f32 0.5, %v2222_v10  ;;  %v2678_v43 = vpop.f32.mrb[10].mxu0  ;;  %v2333_v10 = vpop.permute.xlu0 %2332 }
 0x491   : > { %2858 = vtanh.f32 %v2261_v11  ;;  %v2237_v8 = vadd.f32 %v2678_v43, %v2109_v46  ;;  %v2231_v28 = vpop.f32.mrb[11].mxu0 }
 0x492   : > { %2860 = vtanh.f32 %v2260_v20  ;;  %v2232_v62 = vadd.f32 %v2231_v28, %v2104_v2  ;;  %v2367_v28 = vlaneseq }
 0x493   : > { %v2263_v23 = vmul.f32 0.5, %v2237_v8 }
 0x494   : > { %v2262_v22 = vmul.f32 0.5, %v2232_v62  ;;  %v2681_v30 = vpop.f32.mrb[12].mxu0 }
 0x495   : > { %2862 = vtanh.f32 %v2263_v23  ;;  %v2247_v57 = vadd.f32 %v2681_v30, %v2119_v9  ;;  %v2241_v25 = vpop.f32.mrb[13].mxu0 }
 0x496   : > { %2864 = vtanh.f32 %v2262_v22  ;;  %v2242_v14 = vadd.f32 %v2241_v25, %v2114_v7 }
 0x497   : > { %v2265_v6 = vmul.f32 0.5, %v2247_v57 }
 0x498   : > { %v2264_v36 = vmul.f32 0.5, %v2242_v14  ;;  %v2684_v38 = vpop.f32.mrb[14].mxu0 }
 0x499   : > { %2866 = vtanh.f32 %v2265_v6  ;;  %v2257_v12 = vadd.f32 %v2684_v38, %v2129_v26  ;;  %v2251_v32 = vpop.f32.mrb[15].mxu0  ;;  %v2365_v26 = vpop.permute.xlu0 %2364 }
 0x49a   : > { %2868 = vtanh.f32 %v2264_v36  ;;  %v2252_v24 = vadd.f32 %v2251_v32, %v2124_v51  ;;  %v2368_v51 = vshrl.u32 %v2367_v28, 7 }
 0x49b   : > { %v2859_v56 = vpop.eup %2858  ;;  %v2267_v55 = vmul.f32 0.5, %v2257_v12 }
 0x49c   : > { %v2861_v40 = vpop.eup %2860  ;;  %v2277_v61 = vadd.f32 1.0, %v2859_v56  ;;  %v2266_v4 = vmul.f32 0.5, %v2252_v24  ;;  %v2369_v57 = vsub.s32 0, %v2368_v51 }
 0x49d   : > { %v2276_v19 = vadd.f32 1.0, %v2861_v40  ;;  %2870 = vtanh.f32 %v2267_v55 }
 0x49e   : > { %v2285_v60 = vmul.f32 %v2277_v61, %v2261_v11  ;;  %2872 = vtanh.f32 %v2266_v4 }
 0x49f   : > { %v2863_v15 = vpop.eup %2862  ;;  %v2284_v41 = vmul.f32 %v2276_v19, %v2260_v20  ;;  %v2338_v20 = vpop.permute.xlu1 %2337 }
 0x4a0   : > { %v2865_v21 = vpop.eup %2864  ;;  %v2341_v48 = vmul.f32 %v2308_v50, %v2285_v60  ;;  %v2279_v49 = vadd.f32 1.0, %v2863_v15 }
 0x4a1   : > { %v2340_v3 = vmul.f32 %v2303_v5, %v2284_v41  ;;  %v2278_v27 = vadd.f32 1.0, %v2865_v21 }
 0x4a2   : > { %v2287_v33 = vmul.f32 %v2279_v49, %v2263_v23 }
 0x4a3   : > { %v2867_v53 = vpop.eup %2866  ;;  %v2348_v31 = vadd.f32 %v2341_v48, %v2340_v3  ;;  %v2286_v1 = vmul.f32 %v2278_v27, %v2262_v22 }
 0x4a4   : > { %v2869_v54 = vpop.eup %2868  ;;  %v2281_v13 = vadd.f32 1.0, %v2867_v53  ;;  %v2343_v37 = vmul.f32 %v2318_v34, %v2287_v33 }
 0x4a5   : > { %v2342_v17 = vmul.f32 %v2313_v42, %v2286_v1  ;;  %v2280_v59 = vadd.f32 1.0, %v2869_v54 }
 0x4a6   : > { %v2289_v29 = vmul.f32 %v2281_v13, %v2265_v6  ;;  %v2370_v6 = vrot.slane %v2365_v26, %v2369_v57 }
 0x4a7   : > { %v2871_v35 = vpop.eup %2870  ;;  %v2349_v44 = vadd.f32 %v2348_v31, %v2342_v17  ;;  %v2288_v16 = vmul.f32 %v2280_v59, %v2264_v36 }
 0x4a8   : > { %v2873_v47 = vpop.eup %2872  ;;  %v2283_v63 = vadd.f32 1.0, %v2871_v35  ;;  %v2345_v58 = vmul.f32 %v2328_v39, %v2289_v29 }
 0x4a9   : > { %v2344_v18 = vmul.f32 %v2323_v45, %v2288_v16  ;;  %v2350_v2 = vadd.f32 %v2349_v44, %v2343_v37  ;;  %v2282_v46 = vadd.f32 1.0, %v2873_v47 }
 0x4aa   : > { %v2291_v52 = vmul.f32 %v2283_v63, %v2267_v55 }
 0x4ab   : > { %v2351_v0 = vadd.f32 %v2350_v2, %v2344_v18  ;;  %v2290_v7 = vmul.f32 %v2282_v46, %v2266_v4 }
 0x4ac   : > { %v2347_v43 = vmul.f32 %v2338_v20, %v2291_v52 }
 0x4ad   : > { %v2346_v11 = vmul.f32 %v2333_v10, %v2290_v7  ;;  %v2352_v9 = vadd.f32 %v2351_v0, %v2345_v58 }
 0x4af   : > { %v2353_v8 = vadd.f32 %v2352_v9, %v2346_v11 }
 0x4b1   : > { %v2354_v62 = vadd.f32 %v2353_v8, %v2347_v43 }
 0x4b3   : > { %v2355_v23 = vrot.slane %v2354_v62, 4 }
 0x4b5   : > { %v2356_v22 = vadd.f32 %v2355_v23, %v2354_v62 }
 0x4b7   : > { %v2357_v30 = vrot.slane %v2356_v22, 2 }
 0x4b9   : > { %v2358_v25 = vadd.f32 %v2357_v30, %v2356_v22 }
 0x4bb   : > { %v2359_v14 = vrot.slane %v2358_v25, 1 }
 0x4bd   : > { %v2360_v36 = vadd.f32 %v2359_v14, %v2358_v25 }
 0x4bf   : > { %v2371_v38 = vadd.f32 %v2370_v6, %v2360_v36 }
 0x4c1   : > { %2372 = vst [vmem:[%s381_s26] sm:$0x1] %v2371_v38 }
 0x4c2 PF: > { %s23_s19 = sadd.s32 1, %s2880_s19  }
 0x4c3   : > { %p20_p4 = scmp.ge.s32.totalorder %s23_s19, 4  }
 0x4c5   :  { %22 = sbr.rel (!%p20_p4) target bundleno = 3 (0x3), region = 94 }

</bundles_post_ra>
